<compile_context>
chip_gen: v6e
topology: v6e:2x2x1
jax: 0.10.0
libtpu: 0.0.40
codegen_flags: <defaults>
</compile_context>

<pallas_src>
import functools
import math

import jax
import jax.numpy as jnp
from jax.experimental import pallas as pl
from jax.experimental.pallas import tpu as pltpu


def _layer_norm(x, scale, bias, eps):
    mu = jnp.mean(x, axis=-1, keepdims=True)
    xc = x - mu
    var = jnp.mean(xc * xc, axis=-1, keepdims=True)
    return xc * jax.lax.rsqrt(var + eps) * scale + bias


def _gelu_tanh(x):
    # "gelu_pytorch_tanh" approximation: the tanh runs on the EUP and co-issues with
    # MXU/VPU work.  |error| vs exact erf-GELU is <~1e-3 absolute.
    c = math.sqrt(2.0 / math.pi)
    return 0.5 * x * (1.0 + jnp.tanh(c * (x + 0.044715 * (x * x * x))))


def vit_encoder_kernel(x_ref, ln1w_ref, ln1b_ref, wqkv_ref, bqkv_ref,
                       wo_ref, bo_ref, ln2w_ref, ln2b_ref,
                       wi_ref, bi_ref, wo2_ref, bo2_ref, out_ref,
                       acc_ref, ctx_ref, *, num_heads, head_dim, eps):
    """One grid step = (one batch block, one layer).

    x_ref / out_ref : (Bb, S, H)   input hidden states / final hidden states
    acc_ref         : (Bb, S, H) f32 VMEM scratch -- the running residual stream
    ctx_ref         : (S, H) f32 VMEM scratch -- per-element multi-head context
    weights (bf16)  : wqkv (1,H,3H), wo (1,H,H), wi (1,H,I), wo2 (1,I,H)
    vectors (f32)   : ln*/bo/bo2 (1,1,H), bqkv (1,1,3H), bi (1,1,I)
    """
    l = pl.program_id(1)
    num_layers = pl.num_programs(1)
    Bb = acc_ref.shape[0]
    H = num_heads * head_dim
    scale = 1.0 / math.sqrt(head_dim)
    f32 = jnp.float32
    bf16 = jnp.bfloat16

    @pl.when(l == 0)
    def _():
        acc_ref[...] = x_ref[...].astype(f32)

    wqkv = wqkv_ref[0]
    wo = wo_ref[0]
    wi = wi_ref[0]
    wo2 = wo2_ref[0]
    ln1w, ln1b = ln1w_ref[0], ln1b_ref[0]
    ln2w, ln2b = ln2w_ref[0], ln2b_ref[0]
    bqkv, bo, bi, bo2 = bqkv_ref[0], bo_ref[0], bi_ref[0], bo2_ref[0]

    # Static unroll over the batch block: the per-layer weights above are DMA'd once
    # per grid step and reused for every element of the block (the previous version
    # re-streamed the full weight set once per batch element and was HBM-bound).
    for bi_idx in range(Bb):
        hidden = acc_ref[bi_idx]                                   # (S, H) f32 residual

        # ---- attention block (pre-LN) ----
        x1 = _layer_norm(hidden, ln1w, ln1b, eps)                  # (S, H) f32
        qkv = jnp.dot(x1.astype(bf16), wqkv,
                      preferred_element_type=f32) + bqkv           # (S, 3H) f32
        q = qkv[:, 0:H] * scale                                    # fold 1/sqrt(d) into q
        k = qkv[:, H:2 * H]
        v = qkv[:, 2 * H:3 * H]

        # Per-head attention; each head's context is scattered into ctx_ref so the
        # multi-head merge needs no concat/relayout and the output projection below
        # is a single full-depth (K=H) MXU matmul.
        # (Kept as a static unroll for robust lowering at these tiny head counts;
        # for ViT-Base-scale num_heads, convert to lax.fori_loop + pl.ds to bound
        # live ranges of the per-head (S, S) scores.)
        for h in range(num_heads):
            lo = h * head_dim
            hi = lo + head_dim
            qh = q[:, lo:hi].astype(bf16)
            kh = k[:, lo:hi].astype(bf16)
            vh = v[:, lo:hi].astype(bf16)
            s = jax.lax.dot_general(qh, kh, (((1,), (1,)), ((), ())),
                                    preferred_element_type=f32)    # (S, S)
            s = s - jnp.max(s, axis=-1, keepdims=True)
            p = jnp.exp(s)
            p = p * pl.reciprocal(jnp.sum(p, axis=-1, keepdims=True), approx=True)
            ctx_ref[:, lo:hi] = jnp.dot(p.astype(bf16), vh,
                                        preferred_element_type=f32)

        attn = jnp.dot(ctx_ref[...].astype(bf16), wo,
                       preferred_element_type=f32) + bo             # (S, H)
        hidden = hidden + attn                                       # residual 1

        # ---- MLP block (pre-LN) ----
        x2 = _layer_norm(hidden, ln2w, ln2b, eps)
        inter = jnp.dot(x2.astype(bf16), wi,
                        preferred_element_type=f32) + bi             # (S, I)
        inter = _gelu_tanh(inter)
        mlp = jnp.dot(inter.astype(bf16), wo2,
                      preferred_element_type=f32) + bo2              # (S, H)
        hidden = hidden + mlp                                        # residual 2

        acc_ref[bi_idx] = hidden                                     # stays f32 in VMEM

    @pl.when(l == num_layers - 1)
    def _():
        out_ref[...] = acc_ref[...].astype(out_ref.dtype)


def vit_encoder(hidden_states, params, *, num_heads, layer_norm_eps=1e-12,
                batch_block=None):
    """Runs the full ViT encoder stack as one Pallas kernel.

    hidden_states: (B, S, H).
    params (per-layer arrays stacked on a leading layer axis L), Linear as y = x @ W + b
    (W is the transpose of the PyTorch nn.Linear weight):
      ln1_w, ln1_b, ln2_w, ln2_b, bo, bo2 : (L, 1, H)
      wqkv: (L, H, 3H)   bqkv: (L, 1, 3H)   wo: (L, H, H)
      wi:   (L, H, I)    bi:   (L, 1, I)    wo2: (L, I, H)
    """
    B, S, H = hidden_states.shape
    L = params["wqkv"].shape[0]
    I = params["wi"].shape[-1]
    assert H % num_heads == 0
    head_dim = H // num_heads
    # NOTE: for production sequence lengths (e.g. S=197) pad S to a multiple of 128
    # wrapper-side and mask the padded key columns in the softmax.

    if batch_block is None:
        # >=2 parallel grid blocks keep both v7x TensorCores busy while amortizing
        # each layer's weight DMA over B//2 batch elements.
        batch_block = B // 2 if (B % 2 == 0 and B >= 2) else 1
    assert B % batch_block == 0, (B, batch_block)
    nb = B // batch_block

    f32, bf16 = jnp.float32, jnp.bfloat16
    # Weights stream to the MXU in bf16 (halves HBM traffic and VMEM residency);
    # biases / LayerNorm params stay f32 (added to f32 accumulators).
    wqkv = params["wqkv"].astype(bf16)
    wo = params["wo"].astype(bf16)
    wi = params["wi"].astype(bf16)
    wo2 = params["wo2"].astype(bf16)
    ln1_w = params["ln1_w"].astype(f32)
    ln1_b = params["ln1_b"].astype(f32)
    ln2_w = params["ln2_w"].astype(f32)
    ln2_b = params["ln2_b"].astype(f32)
    bqkv = params["bqkv"].astype(f32)
    bo = params["bo"].astype(f32)
    bi = params["bi"].astype(f32)
    bo2 = params["bo2"].astype(f32)

    # Explicit scoped-VMEM budget: double-buffered input/output blocks + scratch +
    # headroom for in-flight intermediates, capped at v7x's 64 MiB per-core VMEM.
    nbytes = lambda shape, dt: math.prod(shape) * jnp.dtype(dt).itemsize
    weight_blk = (nbytes((H, 3 * H), bf16) + nbytes((H, H), bf16)
                  + nbytes((H, I), bf16) + nbytes((I, H), bf16))
    vec_blk = 6 * nbytes((H,), f32) + nbytes((3 * H,), f32) + nbytes((I,), f32)
    act_blk = 2 * nbytes((batch_block, S, H), hidden_states.dtype)   # x + out blocks
    scratch = nbytes((batch_block, S, H), f32) + nbytes((S, H), f32)
    live = nbytes((S, 3 * H), f32) + 2 * nbytes((S, S), f32) + 2 * nbytes((S, I), f32)
    vmem_needed = 2 * (weight_blk + vec_blk + act_blk) + scratch + live
    vmem_limit = int(min(64 * 1024 * 1024,
                         max(32 * 1024 * 1024, 2 * vmem_needed + (4 << 20))))

    kernel = functools.partial(vit_encoder_kernel, num_heads=num_heads,
                               head_dim=head_dim, eps=layer_norm_eps)

    hid_spec = pl.BlockSpec((batch_block, S, H), lambda b, l: (b, 0, 0))
    vecH_spec = pl.BlockSpec((1, 1, H), lambda b, l: (l, 0, 0))
    vec3H_spec = pl.BlockSpec((1, 1, 3 * H), lambda b, l: (l, 0, 0))
    vecI_spec = pl.BlockSpec((1, 1, I), lambda b, l: (l, 0, 0))
    wqkv_spec = pl.BlockSpec((1, H, 3 * H), lambda b, l: (l, 0, 0))
    wo_spec = pl.BlockSpec((1, H, H), lambda b, l: (l, 0, 0))
    wi_spec = pl.BlockSpec((1, H, I), lambda b, l: (l, 0, 0))
    wo2_spec = pl.BlockSpec((1, I, H), lambda b, l: (l, 0, 0))

    out = pl.pallas_call(
        kernel,
        out_shape=jax.ShapeDtypeStruct((B, S, H), hidden_states.dtype),
        grid_spec=pltpu.PrefetchScalarGridSpec(
            num_scalar_prefetch=0,
            grid=(nb, L),
            in_specs=[
                hid_spec,                    # hidden_states
                vecH_spec, vecH_spec,        # ln1 scale / bias
                wqkv_spec, vec3H_spec,       # fused QKV weight / bias
                wo_spec, vecH_spec,          # attention output proj / bias
                vecH_spec, vecH_spec,        # ln2 scale / bias
                wi_spec, vecI_spec,          # MLP up proj / bias
                wo2_spec, vecH_spec,         # MLP down proj / bias
            ],
            out_specs=pl.BlockSpec((batch_block, S, H), lambda b, l: (b, 0, 0)),
            scratch_shapes=[
                pltpu.VMEM((batch_block, S, H), jnp.float32),   # f32 residual stream
                pltpu.VMEM((S, H), jnp.float32),                # multi-head context
            ],
        ),
        compiler_params=pltpu.CompilerParams(
            dimension_semantics=("parallel", "arbitrary"),
            vmem_limit_bytes=vmem_limit),
    )(hidden_states, ln1_w, ln1_b, wqkv, bqkv, wo, bo, ln2_w, ln2_b,
      wi, bi, wo2, bo2)
    return out


def reference(hidden_states, params, *, num_heads, layer_norm_eps=1e-12):
    """Pure-JAX reference with the PyTorch ViTEncoder eval-forward structure.

    Uses the same mixed-precision recipe as the kernel (bf16 matmul operands, f32
    accumulation, f32 residual / LayerNorm) so the comparison isolates the Pallas
    implementation; GELU is the exact erf form and softmax uses an exact divide
    (the kernel uses tanh-GELU and an approximate reciprocal, both <~1e-3 off).
    """
    f32, bf16 = jnp.float32, jnp.bfloat16
    x = hidden_states.astype(f32)
    B, S, H = x.shape
    L = params["wqkv"].shape[0]
    D = H // num_heads
    scale = 1.0 / math.sqrt(D)

    def dot(a, b):
        return jnp.dot(a.astype(bf16), b.astype(bf16), preferred_element_type=f32)

    for l in range(L):
        h1 = _layer_norm(x, params["ln1_w"][l], params["ln1_b"][l], layer_norm_eps)
        qkv = dot(h1, params["wqkv"][l]) + params["bqkv"][l]
        q, k, v = qkv[..., :H] * scale, qkv[..., H:2 * H], qkv[..., 2 * H:]
        q = q.reshape(B, S, num_heads, D).transpose(0, 2, 1, 3)
        k = k.reshape(B, S, num_heads, D).transpose(0, 2, 1, 3)
        v = v.reshape(B, S, num_heads, D).transpose(0, 2, 1, 3)
        s = jnp.einsum("bhqd,bhkd->bhqk", q.astype(bf16), k.astype(bf16),
                       preferred_element_type=f32)
        s = s - jnp.max(s, axis=-1, keepdims=True)
        p = jnp.exp(s)
        p = p / jnp.sum(p, axis=-1, keepdims=True)
        ctx = jnp.einsum("bhqk,bhkd->bhqd", p.astype(bf16), v.astype(bf16),
                         preferred_element_type=f32)
        ctx = ctx.transpose(0, 2, 1, 3).reshape(B, S, H)
        attn = dot(ctx, params["wo"][l]) + params["bo"][l]
        x = x + attn
        h2 = _layer_norm(x, params["ln2_w"][l], params["ln2_b"][l], layer_norm_eps)
        inter = dot(h2, params["wi"][l]) + params["bi"][l]
        inter = 0.5 * inter * (1.0 + jax.lax.erf(inter / math.sqrt(2.0)))
        x = x + dot(inter, params["wo2"][l]) + params["bo2"][l]
    return x.astype(hidden_states.dtype)


if __name__ == "__main__":
    # Small config: batch=4, seq=8, hidden=32, heads=4 (head_dim 8), intermediate=128,
    # layers=2.  Default batch_block = 2 -> grid = (2, 2): demonstrates both the
    # batch-in-block weight amortization and the size-2 parallel leading axis.
    B, S, H, NH, L = 4, 8, 32, 4, 2
    I = 4 * H

    key = jax.random.PRNGKey(0)
    keys = jax.random.split(key, 13)
    w = lambda k, shape, s=0.1: jax.random.normal(k, shape, dtype=jnp.float32) * s
    bf16 = jnp.bfloat16

    params = {
        "ln1_w": 1.0 + w(keys[0], (L, 1, H)),
        "ln1_b": w(keys[1], (L, 1, H)),
        "wqkv": w(keys[2], (L, H, 3 * H)).astype(bf16),
        "bqkv": w(keys[3], (L, 1, 3 * H)),
        "wo": w(keys[4], (L, H, H)).astype(bf16),
        "bo": w(keys[5], (L, 1, H)),
        "ln2_w": 1.0 + w(keys[6], (L, 1, H)),
        "ln2_b": w(keys[7], (L, 1, H)),
        "wi": w(keys[8], (L, H, I)).astype(bf16),
        "bi": w(keys[9], (L, 1, I)),
        "wo2": w(keys[10], (L, I, H)).astype(bf16),
        "bo2": w(keys[11], (L, 1, H)),
    }
    hidden_states = jax.random.normal(keys[12], (B, S, H), dtype=jnp.float32)

    out = vit_encoder(hidden_states, params, num_heads=NH, layer_norm_eps=1e-12)
    out = jax.block_until_ready(out)

    ref = reference(hidden_states, params, num_heads=NH, layer_norm_eps=1e-12)
    assert out.shape == (B, S, H), out.shape
    err = float(jnp.max(jnp.abs(out.astype(jnp.float32) - ref.astype(jnp.float32))))
    # Tolerance covers the kernel's tanh-GELU and approx-reciprocal deviations.
    assert err < 1e-2, err

    print("KERNEL_OK")
</pallas_src>

<mosaic_0001>
module attributes {stable_mosaic.version = 11 : i64} {
  func.func @vit_encoder_kernel(%arg0: i32, %arg1: i32, %arg2: memref<2x8x32xf32, #tpu.memory_space<vmem>>, %arg3: memref<1x1x32xf32, #tpu.memory_space<vmem>>, %arg4: memref<1x1x32xf32, #tpu.memory_space<vmem>>, %arg5: memref<1x32x96xbf16, #tpu.memory_space<vmem>>, %arg6: memref<1x1x96xf32, #tpu.memory_space<vmem>>, %arg7: memref<1x32x32xbf16, #tpu.memory_space<vmem>>, %arg8: memref<1x1x32xf32, #tpu.memory_space<vmem>>, %arg9: memref<1x1x32xf32, #tpu.memory_space<vmem>>, %arg10: memref<1x1x32xf32, #tpu.memory_space<vmem>>, %arg11: memref<1x32x128xbf16, #tpu.memory_space<vmem>>, %arg12: memref<1x1x128xf32, #tpu.memory_space<vmem>>, %arg13: memref<1x128x32xbf16, #tpu.memory_space<vmem>>, %arg14: memref<1x1x32xf32, #tpu.memory_space<vmem>>, %arg15: memref<2x8x32xf32, #tpu.memory_space<vmem>>, %arg16: memref<2x8x32xf32, #tpu.memory_space<vmem>>, %arg17: memref<8x32xf32, #tpu.memory_space<vmem>>) attributes {dimension_semantics = [#tpu.dimension_semantics<parallel>, #tpu.dimension_semantics<arbitrary>], iteration_bounds = array<i64: 2, 2>, scalar_prefetch = 0 : i64, scratch_operands = 2 : i64, tpu.core_type = #tpu.core_type<tc>, window_params = [{transform_indices = @transform_0, window_bounds = array<i64: 2, 8, 32>}, {transform_indices = @transform_1, window_bounds = array<i64: 1, 1, 32>}, {transform_indices = @transform_2, window_bounds = array<i64: 1, 1, 32>}, {transform_indices = @transform_3, window_bounds = array<i64: 1, 32, 96>}, {transform_indices = @transform_4, window_bounds = array<i64: 1, 1, 96>}, {transform_indices = @transform_5, window_bounds = array<i64: 1, 32, 32>}, {transform_indices = @transform_6, window_bounds = array<i64: 1, 1, 32>}, {transform_indices = @transform_7, window_bounds = array<i64: 1, 1, 32>}, {transform_indices = @transform_8, window_bounds = array<i64: 1, 1, 32>}, {transform_indices = @transform_9, window_bounds = array<i64: 1, 32, 128>}, {transform_indices = @transform_10, window_bounds = array<i64: 1, 1, 128>}, {transform_indices = @transform_11, window_bounds = array<i64: 1, 128, 32>}, {transform_indices = @transform_12, window_bounds = array<i64: 1, 1, 32>}, {transform_indices = @transform_13, window_bounds = array<i64: 2, 8, 32>}]} {
    %c0_i32 = arith.constant 0 : i32
    %0 = arith.cmpi eq, %arg1, %c0_i32 : i32
    %1 = arith.extui %0 : i1 to i32
    %c0_i32_0 = arith.constant 0 : i32
    %2 = arith.cmpi ne, %1, %c0_i32_0 : i32
    scf.if %2 {
      %c0_134 = arith.constant 0 : index
      %c0_135 = arith.constant 0 : index
      %c0_136 = arith.constant 0 : index
      %354 = vector.load %arg2[%c0_134, %c0_135, %c0_136] : memref<2x8x32xf32, #tpu.memory_space<vmem>>, vector<2x8x32xf32>
      %c0_137 = arith.constant 0 : index
      %c0_138 = arith.constant 0 : index
      %c0_139 = arith.constant 0 : index
      %355 = vector.load %arg16[%c0_137, %c0_138, %c0_139] : memref<2x8x32xf32, #tpu.memory_space<vmem>>, vector<2x8x32xf32>
      tpu.vector_store %arg16[%c0_137, %c0_138, %c0_139], %354 {strides = array<i32>} : memref<2x8x32xf32, #tpu.memory_space<vmem>>, vector<2x8x32xf32>,
    } else {
    }
    %c0 = arith.constant 0 : index
    %c0_1 = arith.constant 0 : index
    %c0_2 = arith.constant 0 : index
    %3 = vector.load %arg5[%c0, %c0_1, %c0_2] : memref<1x32x96xbf16, #tpu.memory_space<vmem>>, vector<1x32x96xbf16>
    %4 = vector.shape_cast %3 : vector<1x32x96xbf16> to vector<32x96xbf16>
    %c0_3 = arith.constant 0 : index
    %c0_4 = arith.constant 0 : index
    %c0_5 = arith.constant 0 : index
    %5 = vector.load %arg7[%c0_3, %c0_4, %c0_5] : memref<1x32x32xbf16, #tpu.memory_space<vmem>>, vector<1x32x32xbf16>
    %6 = vector.shape_cast %5 : vector<1x32x32xbf16> to vector<32x32xbf16>
    %c0_6 = arith.constant 0 : index
    %c0_7 = arith.constant 0 : index
    %c0_8 = arith.constant 0 : index
    %7 = vector.load %arg11[%c0_6, %c0_7, %c0_8] : memref<1x32x128xbf16, #tpu.memory_space<vmem>>, vector<1x32x128xbf16>
    %8 = vector.shape_cast %7 : vector<1x32x128xbf16> to vector<32x128xbf16>
    %c0_9 = arith.constant 0 : index
    %c0_10 = arith.constant 0 : index
    %c0_11 = arith.constant 0 : index
    %9 = vector.load %arg13[%c0_9, %c0_10, %c0_11] : memref<1x128x32xbf16, #tpu.memory_space<vmem>>, vector<1x128x32xbf16>
    %10 = vector.shape_cast %9 : vector<1x128x32xbf16> to vector<128x32xbf16>
    %c0_12 = arith.constant 0 : index
    %c0_13 = arith.constant 0 : index
    %c0_14 = arith.constant 0 : index
    %11 = vector.load %arg3[%c0_12, %c0_13, %c0_14] : memref<1x1x32xf32, #tpu.memory_space<vmem>>, vector<1x1x32xf32>
    %12 = vector.shape_cast %11 : vector<1x1x32xf32> to vector<1x32xf32>
    %c0_15 = arith.constant 0 : index
    %c0_16 = arith.constant 0 : index
    %c0_17 = arith.constant 0 : index
    %13 = vector.load %arg4[%c0_15, %c0_16, %c0_17] : memref<1x1x32xf32, #tpu.memory_space<vmem>>, vector<1x1x32xf32>
    %14 = vector.shape_cast %13 : vector<1x1x32xf32> to vector<1x32xf32>
    %c0_18 = arith.constant 0 : index
    %c0_19 = arith.constant 0 : index
    %c0_20 = arith.constant 0 : index
    %15 = vector.load %arg9[%c0_18, %c0_19, %c0_20] : memref<1x1x32xf32, #tpu.memory_space<vmem>>, vector<1x1x32xf32>
    %16 = vector.shape_cast %15 : vector<1x1x32xf32> to vector<1x32xf32>
    %c0_21 = arith.constant 0 : index
    %c0_22 = arith.constant 0 : index
    %c0_23 = arith.constant 0 : index
    %17 = vector.load %arg10[%c0_21, %c0_22, %c0_23] : memref<1x1x32xf32, #tpu.memory_space<vmem>>, vector<1x1x32xf32>
    %18 = vector.shape_cast %17 : vector<1x1x32xf32> to vector<1x32xf32>
    %c0_24 = arith.constant 0 : index
    %c0_25 = arith.constant 0 : index
    %c0_26 = arith.constant 0 : index
    %19 = vector.load %arg6[%c0_24, %c0_25, %c0_26] : memref<1x1x96xf32, #tpu.memory_space<vmem>>, vector<1x1x96xf32>
    %20 = vector.shape_cast %19 : vector<1x1x96xf32> to vector<1x96xf32>
    %c0_27 = arith.constant 0 : index
    %c0_28 = arith.constant 0 : index
    %c0_29 = arith.constant 0 : index
    %21 = vector.load %arg8[%c0_27, %c0_28, %c0_29] : memref<1x1x32xf32, #tpu.memory_space<vmem>>, vector<1x1x32xf32>
    %22 = vector.shape_cast %21 : vector<1x1x32xf32> to vector<1x32xf32>
    %c0_30 = arith.constant 0 : index
    %c0_31 = arith.constant 0 : index
    %c0_32 = arith.constant 0 : index
    %23 = vector.load %arg12[%c0_30, %c0_31, %c0_32] : memref<1x1x128xf32, #tpu.memory_space<vmem>>, vector<1x1x128xf32>
    %24 = vector.shape_cast %23 : vector<1x1x128xf32> to vector<1x128xf32>
    %c0_33 = arith.constant 0 : index
    %c0_34 = arith.constant 0 : index
    %c0_35 = arith.constant 0 : index
    %25 = vector.load %arg14[%c0_33, %c0_34, %c0_35] : memref<1x1x32xf32, #tpu.memory_space<vmem>>, vector<1x1x32xf32>
    %26 = vector.shape_cast %25 : vector<1x1x32xf32> to vector<1x32xf32>
    %c0_36 = arith.constant 0 : index
    %c0_37 = arith.constant 0 : index
    %c0_38 = arith.constant 0 : index
    %27 = vector.load %arg16[%c0_36, %c0_37, %c0_38] : memref<2x8x32xf32, #tpu.memory_space<vmem>>, vector<1x8x32xf32>
    %28 = vector.shape_cast %27 : vector<1x8x32xf32> to vector<8x32xf32>
    %cst = arith.constant dense<0.000000e+00> : vector<8xf32>
    %29 = vector.multi_reduction <add>, %28, %cst [1] : vector<8x32xf32> to vector<8xf32>
    %30 = vector.shape_cast %29 : vector<8xf32> to vector<8x1xf32>
    %cst_39 = arith.constant 3.200000e+01 : f32
    %31 = vector.broadcast %cst_39 : f32 to vector<8x1xf32>
    %32 = arith.divf %30, %31 : vector<8x1xf32>
    %33 = vector.broadcast %32 : vector<8x1xf32> to vector<8x32xf32>
    %34 = arith.subf %28, %33 : vector<8x32xf32>
    %35 = arith.mulf %34, %34 : vector<8x32xf32>
    %cst_40 = arith.constant dense<0.000000e+00> : vector<8xf32>
    %36 = vector.multi_reduction <add>, %35, %cst_40 [1] : vector<8x32xf32> to vector<8xf32>
    %37 = vector.shape_cast %36 : vector<8xf32> to vector<8x1xf32>
    %cst_41 = arith.constant 3.200000e+01 : f32
    %38 = vector.broadcast %cst_41 : f32 to vector<8x1xf32>
    %39 = arith.divf %37, %38 : vector<8x1xf32>
    %cst_42 = arith.constant 9.99999996E-13 : f32
    %40 = vector.broadcast %cst_42 : f32 to vector<8x1xf32>
    %41 = arith.addf %39, %40 : vector<8x1xf32>
    %42 = math.rsqrt %41 : vector<8x1xf32>
    %43 = vector.broadcast %42 : vector<8x1xf32> to vector<8x32xf32>
    %44 = arith.mulf %34, %43 : vector<8x32xf32>
    %45 = vector.broadcast %12 : vector<1x32xf32> to vector<8x32xf32>
    %46 = arith.mulf %44, %45 : vector<8x32xf32>
    %47 = vector.broadcast %14 : vector<1x32xf32> to vector<8x32xf32>
    %48 = arith.addf %46, %47 : vector<8x32xf32>
    %49 = arith.truncf %48 : vector<8x32xf32> to vector<8x32xbf16>
    %cst_43 = arith.constant dense<0.000000e+00> : vector<8x96xf32>
    %50 = tpu.matmul %49, %4, %cst_43 {dimension_numbers = #tpu.dot_dimension_numbers<[1], [0], [0], [1], [0, 0, 1, 1], [], []>} : vector<8x32xbf16>, vector<32x96xbf16>, vector<8x96xf32> -> vector<8x96xf32>
    %51 = vector.broadcast %20 : vector<1x96xf32> to vector<8x96xf32>
    %52 = arith.addf %50, %51 : vector<8x96xf32>
    %53 = vector.extract_strided_slice %52 {offsets = [0, 0], sizes = [8, 32], strides = [1, 1]} : vector<8x96xf32> to vector<8x32xf32>
    %cst_44 = arith.constant 0.353553385 : f32
    %54 = vector.broadcast %cst_44 : f32 to vector<8x32xf32>
    %55 = arith.mulf %53, %54 : vector<8x32xf32>
    %56 = vector.extract_strided_slice %52 {offsets = [0, 32], sizes = [8, 32], strides = [1, 1]} : vector<8x96xf32> to vector<8x32xf32>
    %57 = vector.extract_strided_slice %52 {offsets = [0, 64], sizes = [8, 32], strides = [1, 1]} : vector<8x96xf32> to vector<8x32xf32>
    %58 = vector.extract_strided_slice %55 {offsets = [0, 0], sizes = [8, 8], strides = [1, 1]} : vector<8x32xf32> to vector<8x8xf32>
    %59 = arith.truncf %58 : vector<8x8xf32> to vector<8x8xbf16>
    %60 = vector.extract_strided_slice %56 {offsets = [0, 0], sizes = [8, 8], strides = [1, 1]} : vector<8x32xf32> to vector<8x8xf32>
    %61 = arith.truncf %60 : vector<8x8xf32> to vector<8x8xbf16>
    %62 = vector.extract_strided_slice %57 {offsets = [0, 0], sizes = [8, 8], strides = [1, 1]} : vector<8x32xf32> to vector<8x8xf32>
    %63 = arith.truncf %62 : vector<8x8xf32> to vector<8x8xbf16>
    %cst_45 = arith.constant dense<0.000000e+00> : vector<8x8xf32>
    %64 = tpu.matmul %59, %61, %cst_45 {dimension_numbers = #tpu.dot_dimension_numbers<[1], [1], [0], [0], [0, 0, 1, 0], [], []>} : vector<8x8xbf16>, vector<8x8xbf16>, vector<8x8xf32> -> vector<8x8xf32>
    %cst_46 = arith.constant dense<0xFF800000> : vector<8xf32>
    %65 = vector.multi_reduction <maximumf>, %64, %cst_46 [1] : vector<8x8xf32> to vector<8xf32>
    %66 = vector.shape_cast %65 : vector<8xf32> to vector<8x1xf32>
    %67 = vector.broadcast %66 : vector<8x1xf32> to vector<8x8xf32>
    %68 = arith.subf %64, %67 : vector<8x8xf32>
    %69 = math.exp %68 : vector<8x8xf32>
    %cst_47 = arith.constant dense<0.000000e+00> : vector<8xf32>
    %70 = vector.multi_reduction <add>, %69, %cst_47 [1] : vector<8x8xf32> to vector<8xf32>
    %71 = vector.shape_cast %70 : vector<8xf32> to vector<8x1xf32>
    %72 = tpu.reciprocal %71 {approx = true} : vector<8x1xf32> -> vector<8x1xf32>
    %73 = vector.broadcast %72 : vector<8x1xf32> to vector<8x8xf32>
    %74 = arith.mulf %69, %73 : vector<8x8xf32>
    %75 = arith.truncf %74 : vector<8x8xf32> to vector<8x8xbf16>
    %cst_48 = arith.constant dense<0.000000e+00> : vector<8x8xf32>
    %76 = tpu.matmul %75, %63, %cst_48 {dimension_numbers = #tpu.dot_dimension_numbers<[1], [0], [0], [1], [0, 0, 1, 1], [], []>} : vector<8x8xbf16>, vector<8x8xbf16>, vector<8x8xf32> -> vector<8x8xf32>
    %c0_49 = arith.constant 0 : index
    %c0_50 = arith.constant 0 : index
    %77 = vector.load %arg17[%c0_49, %c0_50] : memref<8x32xf32, #tpu.memory_space<vmem>>, vector<8x8xf32>
    tpu.vector_store %arg17[%c0_49, %c0_50], %76 {strides = array<i32>} : memref<8x32xf32, #tpu.memory_space<vmem>>, vector<8x8xf32>,
    %78 = vector.extract_strided_slice %55 {offsets = [0, 8], sizes = [8, 8], strides = [1, 1]} : vector<8x32xf32> to vector<8x8xf32>
    %79 = arith.truncf %78 : vector<8x8xf32> to vector<8x8xbf16>
    %80 = vector.extract_strided_slice %56 {offsets = [0, 8], sizes = [8, 8], strides = [1, 1]} : vector<8x32xf32> to vector<8x8xf32>
    %81 = arith.truncf %80 : vector<8x8xf32> to vector<8x8xbf16>
    %82 = vector.extract_strided_slice %57 {offsets = [0, 8], sizes = [8, 8], strides = [1, 1]} : vector<8x32xf32> to vector<8x8xf32>
    %83 = arith.truncf %82 : vector<8x8xf32> to vector<8x8xbf16>
    %cst_51 = arith.constant dense<0.000000e+00> : vector<8x8xf32>
    %84 = tpu.matmul %79, %81, %cst_51 {dimension_numbers = #tpu.dot_dimension_numbers<[1], [1], [0], [0], [0, 0, 1, 0], [], []>} : vector<8x8xbf16>, vector<8x8xbf16>, vector<8x8xf32> -> vector<8x8xf32>
    %cst_52 = arith.constant dense<0xFF800000> : vector<8xf32>
    %85 = vector.multi_reduction <maximumf>, %84, %cst_52 [1] : vector<8x8xf32> to vector<8xf32>
    %86 = vector.shape_cast %85 : vector<8xf32> to vector<8x1xf32>
    %87 = vector.broadcast %86 : vector<8x1xf32> to vector<8x8xf32>
    %88 = arith.subf %84, %87 : vector<8x8xf32>
    %89 = math.exp %88 : vector<8x8xf32>
    %cst_53 = arith.constant dense<0.000000e+00> : vector<8xf32>
    %90 = vector.multi_reduction <add>, %89, %cst_53 [1] : vector<8x8xf32> to vector<8xf32>
    %91 = vector.shape_cast %90 : vector<8xf32> to vector<8x1xf32>
    %92 = tpu.reciprocal %91 {approx = true} : vector<8x1xf32> -> vector<8x1xf32>
    %93 = vector.broadcast %92 : vector<8x1xf32> to vector<8x8xf32>
    %94 = arith.mulf %89, %93 : vector<8x8xf32>
    %95 = arith.truncf %94 : vector<8x8xf32> to vector<8x8xbf16>
    %cst_54 = arith.constant dense<0.000000e+00> : vector<8x8xf32>
    %96 = tpu.matmul %95, %83, %cst_54 {dimension_numbers = #tpu.dot_dimension_numbers<[1], [0], [0], [1], [0, 0, 1, 1], [], []>} : vector<8x8xbf16>, vector<8x8xbf16>, vector<8x8xf32> -> vector<8x8xf32>
    %c0_55 = arith.constant 0 : index
    %c8 = arith.constant 8 : index
    %97 = vector.load %arg17[%c0_55, %c8] : memref<8x32xf32, #tpu.memory_space<vmem>>, vector<8x8xf32>
    tpu.vector_store %arg17[%c0_55, %c8], %96 {strides = array<i32>} : memref<8x32xf32, #tpu.memory_space<vmem>>, vector<8x8xf32>,
    %98 = vector.extract_strided_slice %55 {offsets = [0, 16], sizes = [8, 8], strides = [1, 1]} : vector<8x32xf32> to vector<8x8xf32>
    %99 = arith.truncf %98 : vector<8x8xf32> to vector<8x8xbf16>
    %100 = vector.extract_strided_slice %56 {offsets = [0, 16], sizes = [8, 8], strides = [1, 1]} : vector<8x32xf32> to vector<8x8xf32>
    %101 = arith.truncf %100 : vector<8x8xf32> to vector<8x8xbf16>
    %102 = vector.extract_strided_slice %57 {offsets = [0, 16], sizes = [8, 8], strides = [1, 1]} : vector<8x32xf32> to vector<8x8xf32>
    %103 = arith.truncf %102 : vector<8x8xf32> to vector<8x8xbf16>
    %cst_56 = arith.constant dense<0.000000e+00> : vector<8x8xf32>
    %104 = tpu.matmul %99, %101, %cst_56 {dimension_numbers = #tpu.dot_dimension_numbers<[1], [1], [0], [0], [0, 0, 1, 0], [], []>} : vector<8x8xbf16>, vector<8x8xbf16>, vector<8x8xf32> -> vector<8x8xf32>
    %cst_57 = arith.constant dense<0xFF800000> : vector<8xf32>
    %105 = vector.multi_reduction <maximumf>, %104, %cst_57 [1] : vector<8x8xf32> to vector<8xf32>
    %106 = vector.shape_cast %105 : vector<8xf32> to vector<8x1xf32>
    %107 = vector.broadcast %106 : vector<8x1xf32> to vector<8x8xf32>
    %108 = arith.subf %104, %107 : vector<8x8xf32>
    %109 = math.exp %108 : vector<8x8xf32>
    %cst_58 = arith.constant dense<0.000000e+00> : vector<8xf32>
    %110 = vector.multi_reduction <add>, %109, %cst_58 [1] : vector<8x8xf32> to vector<8xf32>
    %111 = vector.shape_cast %110 : vector<8xf32> to vector<8x1xf32>
    %112 = tpu.reciprocal %111 {approx = true} : vector<8x1xf32> -> vector<8x1xf32>
    %113 = vector.broadcast %112 : vector<8x1xf32> to vector<8x8xf32>
    %114 = arith.mulf %109, %113 : vector<8x8xf32>
    %115 = arith.truncf %114 : vector<8x8xf32> to vector<8x8xbf16>
    %cst_59 = arith.constant dense<0.000000e+00> : vector<8x8xf32>
    %116 = tpu.matmul %115, %103, %cst_59 {dimension_numbers = #tpu.dot_dimension_numbers<[1], [0], [0], [1], [0, 0, 1, 1], [], []>} : vector<8x8xbf16>, vector<8x8xbf16>, vector<8x8xf32> -> vector<8x8xf32>
    %c0_60 = arith.constant 0 : index
    %c16 = arith.constant 16 : index
    %117 = vector.load %arg17[%c0_60, %c16] : memref<8x32xf32, #tpu.memory_space<vmem>>, vector<8x8xf32>
    tpu.vector_store %arg17[%c0_60, %c16], %116 {strides = array<i32>} : memref<8x32xf32, #tpu.memory_space<vmem>>, vector<8x8xf32>,
    %118 = vector.extract_strided_slice %55 {offsets = [0, 24], sizes = [8, 8], strides = [1, 1]} : vector<8x32xf32> to vector<8x8xf32>
    %119 = arith.truncf %118 : vector<8x8xf32> to vector<8x8xbf16>
    %120 = vector.extract_strided_slice %56 {offsets = [0, 24], sizes = [8, 8], strides = [1, 1]} : vector<8x32xf32> to vector<8x8xf32>
    %121 = arith.truncf %120 : vector<8x8xf32> to vector<8x8xbf16>
    %122 = vector.extract_strided_slice %57 {offsets = [0, 24], sizes = [8, 8], strides = [1, 1]} : vector<8x32xf32> to vector<8x8xf32>
    %123 = arith.truncf %122 : vector<8x8xf32> to vector<8x8xbf16>
    %cst_61 = arith.constant dense<0.000000e+00> : vector<8x8xf32>
    %124 = tpu.matmul %119, %121, %cst_61 {dimension_numbers = #tpu.dot_dimension_numbers<[1], [1], [0], [0], [0, 0, 1, 0], [], []>} : vector<8x8xbf16>, vector<8x8xbf16>, vector<8x8xf32> -> vector<8x8xf32>
    %cst_62 = arith.constant dense<0xFF800000> : vector<8xf32>
    %125 = vector.multi_reduction <maximumf>, %124, %cst_62 [1] : vector<8x8xf32> to vector<8xf32>
    %126 = vector.shape_cast %125 : vector<8xf32> to vector<8x1xf32>
    %127 = vector.broadcast %126 : vector<8x1xf32> to vector<8x8xf32>
    %128 = arith.subf %124, %127 : vector<8x8xf32>
    %129 = math.exp %128 : vector<8x8xf32>
    %cst_63 = arith.constant dense<0.000000e+00> : vector<8xf32>
    %130 = vector.multi_reduction <add>, %129, %cst_63 [1] : vector<8x8xf32> to vector<8xf32>
    %131 = vector.shape_cast %130 : vector<8xf32> to vector<8x1xf32>
    %132 = tpu.reciprocal %131 {approx = true} : vector<8x1xf32> -> vector<8x1xf32>
    %133 = vector.broadcast %132 : vector<8x1xf32> to vector<8x8xf32>
    %134 = arith.mulf %129, %133 : vector<8x8xf32>
    %135 = arith.truncf %134 : vector<8x8xf32> to vector<8x8xbf16>
    %cst_64 = arith.constant dense<0.000000e+00> : vector<8x8xf32>
    %136 = tpu.matmul %135, %123, %cst_64 {dimension_numbers = #tpu.dot_dimension_numbers<[1], [0], [0], [1], [0, 0, 1, 1], [], []>} : vector<8x8xbf16>, vector<8x8xbf16>, vector<8x8xf32> -> vector<8x8xf32>
    %c0_65 = arith.constant 0 : index
    %c24 = arith.constant 24 : index
    %137 = vector.load %arg17[%c0_65, %c24] : memref<8x32xf32, #tpu.memory_space<vmem>>, vector<8x8xf32>
    tpu.vector_store %arg17[%c0_65, %c24], %136 {strides = array<i32>} : memref<8x32xf32, #tpu.memory_space<vmem>>, vector<8x8xf32>,
    %c0_66 = arith.constant 0 : index
    %c0_67 = arith.constant 0 : index
    %138 = vector.load %arg17[%c0_66, %c0_67] : memref<8x32xf32, #tpu.memory_space<vmem>>, vector<8x32xf32>
    %139 = arith.truncf %138 : vector<8x32xf32> to vector<8x32xbf16>
    %cst_68 = arith.constant dense<0.000000e+00> : vector<8x32xf32>
    %140 = tpu.matmul %139, %6, %cst_68 {dimension_numbers = #tpu.dot_dimension_numbers<[1], [0], [0], [1], [0, 0, 1, 1], [], []>} : vector<8x32xbf16>, vector<32x32xbf16>, vector<8x32xf32> -> vector<8x32xf32>
    %141 = vector.broadcast %22 : vector<1x32xf32> to vector<8x32xf32>
    %142 = arith.addf %140, %141 : vector<8x32xf32>
    %143 = arith.addf %28, %142 : vector<8x32xf32>
    %cst_69 = arith.constant dense<0.000000e+00> : vector<8xf32>
    %144 = vector.multi_reduction <add>, %143, %cst_69 [1] : vector<8x32xf32> to vector<8xf32>
    %145 = vector.shape_cast %144 : vector<8xf32> to vector<8x1xf32>
    %cst_70 = arith.constant 3.200000e+01 : f32
    %146 = vector.broadcast %cst_70 : f32 to vector<8x1xf32>
    %147 = arith.divf %145, %146 : vector<8x1xf32>
    %148 = vector.broadcast %147 : vector<8x1xf32> to vector<8x32xf32>
    %149 = arith.subf %143, %148 : vector<8x32xf32>
    %150 = arith.mulf %149, %149 : vector<8x32xf32>
    %cst_71 = arith.constant dense<0.000000e+00> : vector<8xf32>
    %151 = vector.multi_reduction <add>, %150, %cst_71 [1] : vector<8x32xf32> to vector<8xf32>
    %152 = vector.shape_cast %151 : vector<8xf32> to vector<8x1xf32>
    %cst_72 = arith.constant 3.200000e+01 : f32
    %153 = vector.broadcast %cst_72 : f32 to vector<8x1xf32>
    %154 = arith.divf %152, %153 : vector<8x1xf32>
    %cst_73 = arith.constant 9.99999996E-13 : f32
    %155 = vector.broadcast %cst_73 : f32 to vector<8x1xf32>
    %156 = arith.addf %154, %155 : vector<8x1xf32>
    %157 = math.rsqrt %156 : vector<8x1xf32>
    %158 = vector.broadcast %157 : vector<8x1xf32> to vector<8x32xf32>
    %159 = arith.mulf %149, %158 : vector<8x32xf32>
    %160 = vector.broadcast %16 : vector<1x32xf32> to vector<8x32xf32>
    %161 = arith.mulf %159, %160 : vector<8x32xf32>
    %162 = vector.broadcast %18 : vector<1x32xf32> to vector<8x32xf32>
    %163 = arith.addf %161, %162 : vector<8x32xf32>
    %164 = arith.truncf %163 : vector<8x32xf32> to vector<8x32xbf16>
    %cst_74 = arith.constant dense<0.000000e+00> : vector<8x128xf32>
    %165 = tpu.matmul %164, %8, %cst_74 {dimension_numbers = #tpu.dot_dimension_numbers<[1], [0], [0], [1], [0, 0, 1, 1], [], []>} : vector<8x32xbf16>, vector<32x128xbf16>, vector<8x128xf32> -> vector<8x128xf32>
    %166 = vector.broadcast %24 : vector<1x128xf32> to vector<8x128xf32>
    %167 = arith.addf %165, %166 : vector<8x128xf32>
    %cst_75 = arith.constant 5.000000e-01 : f32
    %168 = vector.broadcast %cst_75 : f32 to vector<8x128xf32>
    %169 = arith.mulf %168, %167 : vector<8x128xf32>
    %170 = arith.mulf %167, %167 : vector<8x128xf32>
    %171 = arith.mulf %170, %167 : vector<8x128xf32>
    %cst_76 = arith.constant 4.471500e-02 : f32
    %172 = vector.broadcast %cst_76 : f32 to vector<8x128xf32>
    %173 = arith.mulf %172, %171 : vector<8x128xf32>
    %174 = arith.addf %167, %173 : vector<8x128xf32>
    %cst_77 = arith.constant 0.797884583 : f32
    %175 = vector.broadcast %cst_77 : f32 to vector<8x128xf32>
    %176 = arith.mulf %175, %174 : vector<8x128xf32>
    %177 = math.tanh %176 : vector<8x128xf32>
    %cst_78 = arith.constant 1.000000e+00 : f32
    %178 = vector.broadcast %cst_78 : f32 to vector<8x128xf32>
    %179 = arith.addf %178, %177 : vector<8x128xf32>
    %180 = arith.mulf %169, %179 : vector<8x128xf32>
    %181 = arith.truncf %180 : vector<8x128xf32> to vector<8x128xbf16>
    %cst_79 = arith.constant dense<0.000000e+00> : vector<8x32xf32>
    %182 = tpu.matmul %181, %10, %cst_79 {dimension_numbers = #tpu.dot_dimension_numbers<[1], [0], [0], [1], [0, 0, 1, 1], [], []>} : vector<8x128xbf16>, vector<128x32xbf16>, vector<8x32xf32> -> vector<8x32xf32>
    %183 = vector.broadcast %26 : vector<1x32xf32> to vector<8x32xf32>
    %184 = arith.addf %182, %183 : vector<8x32xf32>
    %185 = arith.addf %143, %184 : vector<8x32xf32>
    %c0_80 = arith.constant 0 : index
    %c0_81 = arith.constant 0 : index
    %c0_82 = arith.constant 0 : index
    %186 = vector.load %arg16[%c0_80, %c0_81, %c0_82] : memref<2x8x32xf32, #tpu.memory_space<vmem>>, vector<1x8x32xf32>
    %187 = vector.shape_cast %186 : vector<1x8x32xf32> to vector<8x32xf32>
    %188 = vector.shape_cast %185 : vector<8x32xf32> to vector<1x8x32xf32>
    tpu.vector_store %arg16[%c0_80, %c0_81, %c0_82], %188 {strides = array<i32>} : memref<2x8x32xf32, #tpu.memory_space<vmem>>, vector<1x8x32xf32>,
    %c1 = arith.constant 1 : index
    %c0_83 = arith.constant 0 : index
    %c0_84 = arith.constant 0 : index
    %189 = vector.load %arg16[%c1, %c0_83, %c0_84] : memref<2x8x32xf32, #tpu.memory_space<vmem>>, vector<1x8x32xf32>
    %190 = vector.shape_cast %189 : vector<1x8x32xf32> to vector<8x32xf32>
    %cst_85 = arith.constant dense<0.000000e+00> : vector<8xf32>
    %191 = vector.multi_reduction <add>, %190, %cst_85 [1] : vector<8x32xf32> to vector<8xf32>
    %192 = vector.shape_cast %191 : vector<8xf32> to vector<8x1xf32>
    %cst_86 = arith.constant 3.200000e+01 : f32
    %193 = vector.broadcast %cst_86 : f32 to vector<8x1xf32>
    %194 = arith.divf %192, %193 : vector<8x1xf32>
    %195 = vector.broadcast %194 : vector<8x1xf32> to vector<8x32xf32>
    %196 = arith.subf %190, %195 : vector<8x32xf32>
    %197 = arith.mulf %196, %196 : vector<8x32xf32>
    %cst_87 = arith.constant dense<0.000000e+00> : vector<8xf32>
    %198 = vector.multi_reduction <add>, %197, %cst_87 [1] : vector<8x32xf32> to vector<8xf32>
    %199 = vector.shape_cast %198 : vector<8xf32> to vector<8x1xf32>
    %cst_88 = arith.constant 3.200000e+01 : f32
    %200 = vector.broadcast %cst_88 : f32 to vector<8x1xf32>
    %201 = arith.divf %199, %200 : vector<8x1xf32>
    %cst_89 = arith.constant 9.99999996E-13 : f32
    %202 = vector.broadcast %cst_89 : f32 to vector<8x1xf32>
    %203 = arith.addf %201, %202 : vector<8x1xf32>
    %204 = math.rsqrt %203 : vector<8x1xf32>
    %205 = vector.broadcast %204 : vector<8x1xf32> to vector<8x32xf32>
    %206 = arith.mulf %196, %205 : vector<8x32xf32>
    %207 = vector.broadcast %12 : vector<1x32xf32> to vector<8x32xf32>
    %208 = arith.mulf %206, %207 : vector<8x32xf32>
    %209 = vector.broadcast %14 : vector<1x32xf32> to vector<8x32xf32>
    %210 = arith.addf %208, %209 : vector<8x32xf32>
    %211 = arith.truncf %210 : vector<8x32xf32> to vector<8x32xbf16>
    %cst_90 = arith.constant dense<0.000000e+00> : vector<8x96xf32>
    %212 = tpu.matmul %211, %4, %cst_90 {dimension_numbers = #tpu.dot_dimension_numbers<[1], [0], [0], [1], [0, 0, 1, 1], [], []>} : vector<8x32xbf16>, vector<32x96xbf16>, vector<8x96xf32> -> vector<8x96xf32>
    %213 = vector.broadcast %20 : vector<1x96xf32> to vector<8x96xf32>
    %214 = arith.addf %212, %213 : vector<8x96xf32>
    %215 = vector.extract_strided_slice %214 {offsets = [0, 0], sizes = [8, 32], strides = [1, 1]} : vector<8x96xf32> to vector<8x32xf32>
    %cst_91 = arith.constant 0.353553385 : f32
    %216 = vector.broadcast %cst_91 : f32 to vector<8x32xf32>
    %217 = arith.mulf %215, %216 : vector<8x32xf32>
    %218 = vector.extract_strided_slice %214 {offsets = [0, 32], sizes = [8, 32], strides = [1, 1]} : vector<8x96xf32> to vector<8x32xf32>
    %219 = vector.extract_strided_slice %214 {offsets = [0, 64], sizes = [8, 32], strides = [1, 1]} : vector<8x96xf32> to vector<8x32xf32>
    %220 = vector.extract_strided_slice %217 {offsets = [0, 0], sizes = [8, 8], strides = [1, 1]} : vector<8x32xf32> to vector<8x8xf32>
    %221 = arith.truncf %220 : vector<8x8xf32> to vector<8x8xbf16>
    %222 = vector.extract_strided_slice %218 {offsets = [0, 0], sizes = [8, 8], strides = [1, 1]} : vector<8x32xf32> to vector<8x8xf32>
    %223 = arith.truncf %222 : vector<8x8xf32> to vector<8x8xbf16>
    %224 = vector.extract_strided_slice %219 {offsets = [0, 0], sizes = [8, 8], strides = [1, 1]} : vector<8x32xf32> to vector<8x8xf32>
    %225 = arith.truncf %224 : vector<8x8xf32> to vector<8x8xbf16>
    %cst_92 = arith.constant dense<0.000000e+00> : vector<8x8xf32>
    %226 = tpu.matmul %221, %223, %cst_92 {dimension_numbers = #tpu.dot_dimension_numbers<[1], [1], [0], [0], [0, 0, 1, 0], [], []>} : vector<8x8xbf16>, vector<8x8xbf16>, vector<8x8xf32> -> vector<8x8xf32>
    %cst_93 = arith.constant dense<0xFF800000> : vector<8xf32>
    %227 = vector.multi_reduction <maximumf>, %226, %cst_93 [1] : vector<8x8xf32> to vector<8xf32>
    %228 = vector.shape_cast %227 : vector<8xf32> to vector<8x1xf32>
    %229 = vector.broadcast %228 : vector<8x1xf32> to vector<8x8xf32>
    %230 = arith.subf %226, %229 : vector<8x8xf32>
    %231 = math.exp %230 : vector<8x8xf32>
    %cst_94 = arith.constant dense<0.000000e+00> : vector<8xf32>
    %232 = vector.multi_reduction <add>, %231, %cst_94 [1] : vector<8x8xf32> to vector<8xf32>
    %233 = vector.shape_cast %232 : vector<8xf32> to vector<8x1xf32>
    %234 = tpu.reciprocal %233 {approx = true} : vector<8x1xf32> -> vector<8x1xf32>
    %235 = vector.broadcast %234 : vector<8x1xf32> to vector<8x8xf32>
    %236 = arith.mulf %231, %235 : vector<8x8xf32>
    %237 = arith.truncf %236 : vector<8x8xf32> to vector<8x8xbf16>
    %cst_95 = arith.constant dense<0.000000e+00> : vector<8x8xf32>
    %238 = tpu.matmul %237, %225, %cst_95 {dimension_numbers = #tpu.dot_dimension_numbers<[1], [0], [0], [1], [0, 0, 1, 1], [], []>} : vector<8x8xbf16>, vector<8x8xbf16>, vector<8x8xf32> -> vector<8x8xf32>
    %c0_96 = arith.constant 0 : index
    %c0_97 = arith.constant 0 : index
    %239 = vector.load %arg17[%c0_96, %c0_97] : memref<8x32xf32, #tpu.memory_space<vmem>>, vector<8x8xf32>
    tpu.vector_store %arg17[%c0_96, %c0_97], %238 {strides = array<i32>} : memref<8x32xf32, #tpu.memory_space<vmem>>, vector<8x8xf32>,
    %240 = vector.extract_strided_slice %217 {offsets = [0, 8], sizes = [8, 8], strides = [1, 1]} : vector<8x32xf32> to vector<8x8xf32>
    %241 = arith.truncf %240 : vector<8x8xf32> to vector<8x8xbf16>
    %242 = vector.extract_strided_slice %218 {offsets = [0, 8], sizes = [8, 8], strides = [1, 1]} : vector<8x32xf32> to vector<8x8xf32>
    %243 = arith.truncf %242 : vector<8x8xf32> to vector<8x8xbf16>
    %244 = vector.extract_strided_slice %219 {offsets = [0, 8], sizes = [8, 8], strides = [1, 1]} : vector<8x32xf32> to vector<8x8xf32>
    %245 = arith.truncf %244 : vector<8x8xf32> to vector<8x8xbf16>
    %cst_98 = arith.constant dense<0.000000e+00> : vector<8x8xf32>
    %246 = tpu.matmul %241, %243, %cst_98 {dimension_numbers = #tpu.dot_dimension_numbers<[1], [1], [0], [0], [0, 0, 1, 0], [], []>} : vector<8x8xbf16>, vector<8x8xbf16>, vector<8x8xf32> -> vector<8x8xf32>
    %cst_99 = arith.constant dense<0xFF800000> : vector<8xf32>
    %247 = vector.multi_reduction <maximumf>, %246, %cst_99 [1] : vector<8x8xf32> to vector<8xf32>
    %248 = vector.shape_cast %247 : vector<8xf32> to vector<8x1xf32>
    %249 = vector.broadcast %248 : vector<8x1xf32> to vector<8x8xf32>
    %250 = arith.subf %246, %249 : vector<8x8xf32>
    %251 = math.exp %250 : vector<8x8xf32>
    %cst_100 = arith.constant dense<0.000000e+00> : vector<8xf32>
    %252 = vector.multi_reduction <add>, %251, %cst_100 [1] : vector<8x8xf32> to vector<8xf32>
    %253 = vector.shape_cast %252 : vector<8xf32> to vector<8x1xf32>
    %254 = tpu.reciprocal %253 {approx = true} : vector<8x1xf32> -> vector<8x1xf32>
    %255 = vector.broadcast %254 : vector<8x1xf32> to vector<8x8xf32>
    %256 = arith.mulf %251, %255 : vector<8x8xf32>
    %257 = arith.truncf %256 : vector<8x8xf32> to vector<8x8xbf16>
    %cst_101 = arith.constant dense<0.000000e+00> : vector<8x8xf32>
    %258 = tpu.matmul %257, %245, %cst_101 {dimension_numbers = #tpu.dot_dimension_numbers<[1], [0], [0], [1], [0, 0, 1, 1], [], []>} : vector<8x8xbf16>, vector<8x8xbf16>, vector<8x8xf32> -> vector<8x8xf32>
    %c0_102 = arith.constant 0 : index
    %c8_103 = arith.constant 8 : index
    %259 = vector.load %arg17[%c0_102, %c8_103] : memref<8x32xf32, #tpu.memory_space<vmem>>, vector<8x8xf32>
    tpu.vector_store %arg17[%c0_102, %c8_103], %258 {strides = array<i32>} : memref<8x32xf32, #tpu.memory_space<vmem>>, vector<8x8xf32>,
    %260 = vector.extract_strided_slice %217 {offsets = [0, 16], sizes = [8, 8], strides = [1, 1]} : vector<8x32xf32> to vector<8x8xf32>
    %261 = arith.truncf %260 : vector<8x8xf32> to vector<8x8xbf16>
    %262 = vector.extract_strided_slice %218 {offsets = [0, 16], sizes = [8, 8], strides = [1, 1]} : vector<8x32xf32> to vector<8x8xf32>
    %263 = arith.truncf %262 : vector<8x8xf32> to vector<8x8xbf16>
    %264 = vector.extract_strided_slice %219 {offsets = [0, 16], sizes = [8, 8], strides = [1, 1]} : vector<8x32xf32> to vector<8x8xf32>
    %265 = arith.truncf %264 : vector<8x8xf32> to vector<8x8xbf16>
    %cst_104 = arith.constant dense<0.000000e+00> : vector<8x8xf32>
    %266 = tpu.matmul %261, %263, %cst_104 {dimension_numbers = #tpu.dot_dimension_numbers<[1], [1], [0], [0], [0, 0, 1, 0], [], []>} : vector<8x8xbf16>, vector<8x8xbf16>, vector<8x8xf32> -> vector<8x8xf32>
    %cst_105 = arith.constant dense<0xFF800000> : vector<8xf32>
    %267 = vector.multi_reduction <maximumf>, %266, %cst_105 [1] : vector<8x8xf32> to vector<8xf32>
    %268 = vector.shape_cast %267 : vector<8xf32> to vector<8x1xf32>
    %269 = vector.broadcast %268 : vector<8x1xf32> to vector<8x8xf32>
    %270 = arith.subf %266, %269 : vector<8x8xf32>
    %271 = math.exp %270 : vector<8x8xf32>
    %cst_106 = arith.constant dense<0.000000e+00> : vector<8xf32>
    %272 = vector.multi_reduction <add>, %271, %cst_106 [1] : vector<8x8xf32> to vector<8xf32>
    %273 = vector.shape_cast %272 : vector<8xf32> to vector<8x1xf32>
    %274 = tpu.reciprocal %273 {approx = true} : vector<8x1xf32> -> vector<8x1xf32>
    %275 = vector.broadcast %274 : vector<8x1xf32> to vector<8x8xf32>
    %276 = arith.mulf %271, %275 : vector<8x8xf32>
    %277 = arith.truncf %276 : vector<8x8xf32> to vector<8x8xbf16>
    %cst_107 = arith.constant dense<0.000000e+00> : vector<8x8xf32>
    %278 = tpu.matmul %277, %265, %cst_107 {dimension_numbers = #tpu.dot_dimension_numbers<[1], [0], [0], [1], [0, 0, 1, 1], [], []>} : vector<8x8xbf16>, vector<8x8xbf16>, vector<8x8xf32> -> vector<8x8xf32>
    %c0_108 = arith.constant 0 : index
    %c16_109 = arith.constant 16 : index
    %279 = vector.load %arg17[%c0_108, %c16_109] : memref<8x32xf32, #tpu.memory_space<vmem>>, vector<8x8xf32>
    tpu.vector_store %arg17[%c0_108, %c16_109], %278 {strides = array<i32>} : memref<8x32xf32, #tpu.memory_space<vmem>>, vector<8x8xf32>,
    %280 = vector.extract_strided_slice %217 {offsets = [0, 24], sizes = [8, 8], strides = [1, 1]} : vector<8x32xf32> to vector<8x8xf32>
    %281 = arith.truncf %280 : vector<8x8xf32> to vector<8x8xbf16>
    %282 = vector.extract_strided_slice %218 {offsets = [0, 24], sizes = [8, 8], strides = [1, 1]} : vector<8x32xf32> to vector<8x8xf32>
    %283 = arith.truncf %282 : vector<8x8xf32> to vector<8x8xbf16>
    %284 = vector.extract_strided_slice %219 {offsets = [0, 24], sizes = [8, 8], strides = [1, 1]} : vector<8x32xf32> to vector<8x8xf32>
    %285 = arith.truncf %284 : vector<8x8xf32> to vector<8x8xbf16>
    %cst_110 = arith.constant dense<0.000000e+00> : vector<8x8xf32>
    %286 = tpu.matmul %281, %283, %cst_110 {dimension_numbers = #tpu.dot_dimension_numbers<[1], [1], [0], [0], [0, 0, 1, 0], [], []>} : vector<8x8xbf16>, vector<8x8xbf16>, vector<8x8xf32> -> vector<8x8xf32>
    %cst_111 = arith.constant dense<0xFF800000> : vector<8xf32>
    %287 = vector.multi_reduction <maximumf>, %286, %cst_111 [1] : vector<8x8xf32> to vector<8xf32>
    %288 = vector.shape_cast %287 : vector<8xf32> to vector<8x1xf32>
    %289 = vector.broadcast %288 : vector<8x1xf32> to vector<8x8xf32>
    %290 = arith.subf %286, %289 : vector<8x8xf32>
    %291 = math.exp %290 : vector<8x8xf32>
    %cst_112 = arith.constant dense<0.000000e+00> : vector<8xf32>
    %292 = vector.multi_reduction <add>, %291, %cst_112 [1] : vector<8x8xf32> to vector<8xf32>
    %293 = vector.shape_cast %292 : vector<8xf32> to vector<8x1xf32>
    %294 = tpu.reciprocal %293 {approx = true} : vector<8x1xf32> -> vector<8x1xf32>
    %295 = vector.broadcast %294 : vector<8x1xf32> to vector<8x8xf32>
    %296 = arith.mulf %291, %295 : vector<8x8xf32>
    %297 = arith.truncf %296 : vector<8x8xf32> to vector<8x8xbf16>
    %cst_113 = arith.constant dense<0.000000e+00> : vector<8x8xf32>
    %298 = tpu.matmul %297, %285, %cst_113 {dimension_numbers = #tpu.dot_dimension_numbers<[1], [0], [0], [1], [0, 0, 1, 1], [], []>} : vector<8x8xbf16>, vector<8x8xbf16>, vector<8x8xf32> -> vector<8x8xf32>
    %c0_114 = arith.constant 0 : index
    %c24_115 = arith.constant 24 : index
    %299 = vector.load %arg17[%c0_114, %c24_115] : memref<8x32xf32, #tpu.memory_space<vmem>>, vector<8x8xf32>
    tpu.vector_store %arg17[%c0_114, %c24_115], %298 {strides = array<i32>} : memref<8x32xf32, #tpu.memory_space<vmem>>, vector<8x8xf32>,
    %c0_116 = arith.constant 0 : index
    %c0_117 = arith.constant 0 : index
    %300 = vector.load %arg17[%c0_116, %c0_117] : memref<8x32xf32, #tpu.memory_space<vmem>>, vector<8x32xf32>
    %301 = arith.truncf %300 : vector<8x32xf32> to vector<8x32xbf16>
    %cst_118 = arith.constant dense<0.000000e+00> : vector<8x32xf32>
    %302 = tpu.matmul %301, %6, %cst_118 {dimension_numbers = #tpu.dot_dimension_numbers<[1], [0], [0], [1], [0, 0, 1, 1], [], []>} : vector<8x32xbf16>, vector<32x32xbf16>, vector<8x32xf32> -> vector<8x32xf32>
    %303 = vector.broadcast %22 : vector<1x32xf32> to vector<8x32xf32>
    %304 = arith.addf %302, %303 : vector<8x32xf32>
    %305 = arith.addf %190, %304 : vector<8x32xf32>
    %cst_119 = arith.constant dense<0.000000e+00> : vector<8xf32>
    %306 = vector.multi_reduction <add>, %305, %cst_119 [1] : vector<8x32xf32> to vector<8xf32>
    %307 = vector.shape_cast %306 : vector<8xf32> to vector<8x1xf32>
    %cst_120 = arith.constant 3.200000e+01 : f32
    %308 = vector.broadcast %cst_120 : f32 to vector<8x1xf32>
    %309 = arith.divf %307, %308 : vector<8x1xf32>
    %310 = vector.broadcast %309 : vector<8x1xf32> to vector<8x32xf32>
    %311 = arith.subf %305, %310 : vector<8x32xf32>
    %312 = arith.mulf %311, %311 : vector<8x32xf32>
    %cst_121 = arith.constant dense<0.000000e+00> : vector<8xf32>
    %313 = vector.multi_reduction <add>, %312, %cst_121 [1] : vector<8x32xf32> to vector<8xf32>
    %314 = vector.shape_cast %313 : vector<8xf32> to vector<8x1xf32>
    %cst_122 = arith.constant 3.200000e+01 : f32
    %315 = vector.broadcast %cst_122 : f32 to vector<8x1xf32>
    %316 = arith.divf %314, %315 : vector<8x1xf32>
    %cst_123 = arith.constant 9.99999996E-13 : f32
    %317 = vector.broadcast %cst_123 : f32 to vector<8x1xf32>
    %318 = arith.addf %316, %317 : vector<8x1xf32>
    %319 = math.rsqrt %318 : vector<8x1xf32>
    %320 = vector.broadcast %319 : vector<8x1xf32> to vector<8x32xf32>
    %321 = arith.mulf %311, %320 : vector<8x32xf32>
    %322 = vector.broadcast %16 : vector<1x32xf32> to vector<8x32xf32>
    %323 = arith.mulf %321, %322 : vector<8x32xf32>
    %324 = vector.broadcast %18 : vector<1x32xf32> to vector<8x32xf32>
    %325 = arith.addf %323, %324 : vector<8x32xf32>
    %326 = arith.truncf %325 : vector<8x32xf32> to vector<8x32xbf16>
    %cst_124 = arith.constant dense<0.000000e+00> : vector<8x128xf32>
    %327 = tpu.matmul %326, %8, %cst_124 {dimension_numbers = #tpu.dot_dimension_numbers<[1], [0], [0], [1], [0, 0, 1, 1], [], []>} : vector<8x32xbf16>, vector<32x128xbf16>, vector<8x128xf32> -> vector<8x128xf32>
    %328 = vector.broadcast %24 : vector<1x128xf32> to vector<8x128xf32>
    %329 = arith.addf %327, %328 : vector<8x128xf32>
    %cst_125 = arith.constant 5.000000e-01 : f32
    %330 = vector.broadcast %cst_125 : f32 to vector<8x128xf32>
    %331 = arith.mulf %330, %329 : vector<8x128xf32>
    %332 = arith.mulf %329, %329 : vector<8x128xf32>
    %333 = arith.mulf %332, %329 : vector<8x128xf32>
    %cst_126 = arith.constant 4.471500e-02 : f32
    %334 = vector.broadcast %cst_126 : f32 to vector<8x128xf32>
    %335 = arith.mulf %334, %333 : vector<8x128xf32>
    %336 = arith.addf %329, %335 : vector<8x128xf32>
    %cst_127 = arith.constant 0.797884583 : f32
    %337 = vector.broadcast %cst_127 : f32 to vector<8x128xf32>
    %338 = arith.mulf %337, %336 : vector<8x128xf32>
    %339 = math.tanh %338 : vector<8x128xf32>
    %cst_128 = arith.constant 1.000000e+00 : f32
    %340 = vector.broadcast %cst_128 : f32 to vector<8x128xf32>
    %341 = arith.addf %340, %339 : vector<8x128xf32>
    %342 = arith.mulf %331, %341 : vector<8x128xf32>
    %343 = arith.truncf %342 : vector<8x128xf32> to vector<8x128xbf16>
    %cst_129 = arith.constant dense<0.000000e+00> : vector<8x32xf32>
    %344 = tpu.matmul %343, %10, %cst_129 {dimension_numbers = #tpu.dot_dimension_numbers<[1], [0], [0], [1], [0, 0, 1, 1], [], []>} : vector<8x128xbf16>, vector<128x32xbf16>, vector<8x32xf32> -> vector<8x32xf32>
    %345 = vector.broadcast %26 : vector<1x32xf32> to vector<8x32xf32>
    %346 = arith.addf %344, %345 : vector<8x32xf32>
    %347 = arith.addf %305, %346 : vector<8x32xf32>
    %c1_130 = arith.constant 1 : index
    %c0_131 = arith.constant 0 : index
    %c0_132 = arith.constant 0 : index
    %348 = vector.load %arg16[%c1_130, %c0_131, %c0_132] : memref<2x8x32xf32, #tpu.memory_space<vmem>>, vector<1x8x32xf32>
    %349 = vector.shape_cast %348 : vector<1x8x32xf32> to vector<8x32xf32>
    %350 = vector.shape_cast %347 : vector<8x32xf32> to vector<1x8x32xf32>
    tpu.vector_store %arg16[%c1_130, %c0_131, %c0_132], %350 {strides = array<i32>} : memref<2x8x32xf32, #tpu.memory_space<vmem>>, vector<1x8x32xf32>,
    %c1_i32 = arith.constant 1 : i32
    %351 = arith.cmpi eq, %arg1, %c1_i32 : i32
    %352 = arith.extui %351 : i1 to i32
    %c0_i32_133 = arith.constant 0 : i32
    %353 = arith.cmpi ne, %352, %c0_i32_133 : i32
    scf.if %353 {
      %c0_134 = arith.constant 0 : index
      %c0_135 = arith.constant 0 : index
      %c0_136 = arith.constant 0 : index
      %354 = vector.load %arg16[%c0_134, %c0_135, %c0_136] : memref<2x8x32xf32, #tpu.memory_space<vmem>>, vector<2x8x32xf32>
      %c0_137 = arith.constant 0 : index
      %c0_138 = arith.constant 0 : index
      %c0_139 = arith.constant 0 : index
      %355 = vector.load %arg15[%c0_137, %c0_138, %c0_139] : memref<2x8x32xf32, #tpu.memory_space<vmem>>, vector<2x8x32xf32>
      tpu.vector_store %arg15[%c0_137, %c0_138, %c0_139], %354 {strides = array<i32>} : memref<2x8x32xf32, #tpu.memory_space<vmem>>, vector<2x8x32xf32>,
    } else {
    }
    return
  }
  func.func @transform_0(%arg0: i32, %arg1: i32) -> (i32, i32, i32) {
    %c0_i32 = arith.constant 0 : i32
    %c0_i32_0 = arith.constant 0 : i32
    %c0_i32_1 = arith.constant 0 : i32
    return %arg0, %c0_i32, %c0_i32_0 : i32, i32, i32
  }
  func.func @transform_1(%arg0: i32, %arg1: i32) -> (i32, i32, i32) {
    %c0_i32 = arith.constant 0 : i32
    %c0_i32_0 = arith.constant 0 : i32
    %c0_i32_1 = arith.constant 0 : i32
    return %arg1, %c0_i32, %c0_i32_0 : i32, i32, i32
  }
  func.func @transform_2(%arg0: i32, %arg1: i32) -> (i32, i32, i32) {
    %c0_i32 = arith.constant 0 : i32
    %c0_i32_0 = arith.constant 0 : i32
    %c0_i32_1 = arith.constant 0 : i32
    return %arg1, %c0_i32, %c0_i32_0 : i32, i32, i32
  }
  func.func @transform_3(%arg0: i32, %arg1: i32) -> (i32, i32, i32) {
    %c0_i32 = arith.constant 0 : i32
    %c0_i32_0 = arith.constant 0 : i32
    %c0_i32_1 = arith.constant 0 : i32
    return %arg1, %c0_i32, %c0_i32_0 : i32, i32, i32
  }
  func.func @transform_4(%arg0: i32, %arg1: i32) -> (i32, i32, i32) {
    %c0_i32 = arith.constant 0 : i32
    %c0_i32_0 = arith.constant 0 : i32
    %c0_i32_1 = arith.constant 0 : i32
    return %arg1, %c0_i32, %c0_i32_0 : i32, i32, i32
  }
  func.func @transform_5(%arg0: i32, %arg1: i32) -> (i32, i32, i32) {
    %c0_i32 = arith.constant 0 : i32
    %c0_i32_0 = arith.constant 0 : i32
    %c0_i32_1 = arith.constant 0 : i32
    return %arg1, %c0_i32, %c0_i32_0 : i32, i32, i32
  }
  func.func @transform_6(%arg0: i32, %arg1: i32) -> (i32, i32, i32) {
    %c0_i32 = arith.constant 0 : i32
    %c0_i32_0 = arith.constant 0 : i32
    %c0_i32_1 = arith.constant 0 : i32
    return %arg1, %c0_i32, %c0_i32_0 : i32, i32, i32
  }
  func.func @transform_7(%arg0: i32, %arg1: i32) -> (i32, i32, i32) {
    %c0_i32 = arith.constant 0 : i32
    %c0_i32_0 = arith.constant 0 : i32
    %c0_i32_1 = arith.constant 0 : i32
    return %arg1, %c0_i32, %c0_i32_0 : i32, i32, i32
  }
  func.func @transform_8(%arg0: i32, %arg1: i32) -> (i32, i32, i32) {
    %c0_i32 = arith.constant 0 : i32
    %c0_i32_0 = arith.constant 0 : i32
    %c0_i32_1 = arith.constant 0 : i32
    return %arg1, %c0_i32, %c0_i32_0 : i32, i32, i32
  }
  func.func @transform_9(%arg0: i32, %arg1: i32) -> (i32, i32, i32) {
    %c0_i32 = arith.constant 0 : i32
    %c0_i32_0 = arith.constant 0 : i32
    %c0_i32_1 = arith.constant 0 : i32
    return %arg1, %c0_i32, %c0_i32_0 : i32, i32, i32
  }
  func.func @transform_10(%arg0: i32, %arg1: i32) -> (i32, i32, i32) {
    %c0_i32 = arith.constant 0 : i32
    %c0_i32_0 = arith.constant 0 : i32
    %c0_i32_1 = arith.constant 0 : i32
    return %arg1, %c0_i32, %c0_i32_0 : i32, i32, i32
  }
  func.func @transform_11(%arg0: i32, %arg1: i32) -> (i32, i32, i32) {
    %c0_i32 = arith.constant 0 : i32
    %c0_i32_0 = arith.constant 0 : i32
    %c0_i32_1 = arith.constant 0 : i32
    return %arg1, %c0_i32, %c0_i32_0 : i32, i32, i32
  }
  func.func @transform_12(%arg0: i32, %arg1: i32) -> (i32, i32, i32) {
    %c0_i32 = arith.constant 0 : i32
    %c0_i32_0 = arith.constant 0 : i32
    %c0_i32_1 = arith.constant 0 : i32
    return %arg1, %c0_i32, %c0_i32_0 : i32, i32, i32
  }
  func.func @transform_13(%arg0: i32, %arg1: i32) -> (i32, i32, i32) {
    %c0_i32 = arith.constant 0 : i32
    %c0_i32_0 = arith.constant 0 : i32
    %c0_i32_1 = arith.constant 0 : i32
    return %arg0, %c0_i32, %c0_i32_0 : i32, i32, i32
  }
}

</mosaic_0001>

<bundles_post_ra>
// kernel: tpu_custom_call.1
= control target key start
LH: loop header
LB: loop body
LE: loop exit
PB: predicated region body
PF: predicated region fallthrough
CT: control target
= control target key end

     0   :  { %s3625_s0 = inlined_call_operand.vmem [shape: f32[4,8,32], index: 0, kind: input, shape index: {}]   ;;  %s3626_s1 = inlined_call_operand.vmem [shape: f32[2,1,32], index: 1, kind: input, shape index: {}]   ;;  %s3627_s2 = inlined_call_operand.vmem [shape: f32[2,1,32], index: 2, kind: input, shape index: {}]   ;;  %s3628_s3 = inlined_call_operand.vmem [shape: bf16[2,32,96], index: 3, kind: input, shape index: {}]   ;;  %s3629_s4 = inlined_call_operand.vmem [shape: f32[2,1,96], index: 4, kind: input, shape index: {}]   ;;  %s3630_s5 = inlined_call_operand.vmem [shape: bf16[2,32,32], index: 5, kind: input, shape index: {}]   ;;  %s3631_s6 = inlined_call_operand.vmem [shape: f32[2,1,32], index: 6, kind: input, shape index: {}]   ;;  %s3632_s7 = inlined_call_operand.vmem [shape: f32[2,1,32], index: 7, kind: input, shape index: {}]   ;;  %s3633_s8 = inlined_call_operand.vmem [shape: f32[2,1,32], index: 8, kind: input, shape index: {}]   ;;  %s3634_s9 = inlined_call_operand.vmem [shape: bf16[2,32,128], index: 9, kind: input, shape index: {}]   ;;  %s3635_s10 = inlined_call_operand.vmem [shape: f32[2,1,128], index: 10, kind: input, shape index: {}]   ;;  %s3636_s11 = inlined_call_operand.vmem [shape: bf16[2,128,32], index: 11, kind: input, shape index: {}]   ;;  %s3637_s12 = inlined_call_operand.vmem [shape: f32[2,1,32], index: 12, kind: input, shape index: {}]   ;;  %s3638_s13 = inlined_call_operand.hbm [shape: f32[4,8,32], index: 13, kind: output, shape index: {}]  }
   0x1   :  { %3657 = sst [smem:[#allocation20_spill]] %s3625_s0 }
   0x2   :  { %3658 = sst [smem:[#allocation21_spill]] %s3628_s3 }
   0x3   :  { %3659 = sst [smem:[#allocation22_spill]] %s3630_s5 }
   0x4   :  { %3660 = sst [smem:[#allocation23_spill]] %s3632_s7 }
   0x5   :  { %3661 = sst [smem:[#allocation24_spill]] %s3636_s11 }
   0x6   :  { %3662 = sst [smem:[#allocation25_spill]] %s3638_s13 }
   0x7   :  { %18 = vsyncpa [#allocation5], 0 }
   0x8   :  { %20 = vsyncpa [#allocation5 + $0x1], 0  ;;  %s3051_s25 = smov 0   ;;  %s3053_s26 = smov 0  }
   0x9   :  { %s3055_s27 = smov 0   ;;  %s3057_s28 = smov 0  }
   0xa   :  { %s3059_s29 = smov 0   ;;  %s3061_s30 = smov 0  }
   0xb   :  { %s3063_s14 = smov 0   ;;  %s3065_s15 = smov 0  }
   0xc LB: > { %3663 = sst [smem:[#allocation7_spill]] %s2933_s25  ;;  %s2399_s16 = sadd.s32 4294967295, %s2961_s15   ;;  %s2961_s15 = sphi %s3065_s15, %s26_s15   ;;  %s2957_s14 = sphi %s3063_s14, %s3709_s14   ;;  %s2953_s30 = sphi %s3061_s30, %s3708_s30   ;;  %s2949_s29 = sphi %s3059_s29, %s3707_s29   ;;  %s2945_s28 = sphi %s3057_s28, %s3706_s28   ;;  %s2941_s27 = sphi %s3055_s27, %s3705_s27   ;;  %s2937_s26 = sphi %s3053_s26, %s3704_s26   ;;  %s2933_s25 = sphi %s3051_s25, %s3703_s25  }
   0xd   : > { %3664 = sst [smem:[#allocation8_spill]] %s2937_s26  ;;  %s2400_s17 = sadd.s32 4294967294, %s2961_s15  }
   0xe   : > { %3665 = sst [smem:[#allocation9_spill]] %s2941_s27  ;;  %s35_s18 = sadd.s32 1, %s2953_s30 }
   0xf   : > { %3666 = sst [smem:[#allocation10_spill]] %s2945_s28  ;;  %p36_p0 = scmp.ge.s32.totalorder %s35_s18, 2 }
  0x10   : > { %3667 = sst [smem:[#allocation11_spill]] %s2949_s29  ;;  %s38_s19 = sadd.s32 1, %s2957_s14 }
  0x11   : > { %3668 = sst [smem:[#allocation12_spill]] %s2953_s30  ;;  %p393_p1 = scmp.ne.s32.totalorder %s2941_s27, %s2937_s26 }
  0x12   : > { %3669 = sst [smem:[#allocation13_spill]] %s2957_s14  ;;  %p394_p2 = scmp.eq.s32.totalorder %s2399_s16, 3 }
  0x13   : > { %3670 = sst [smem:[#allocation14_spill]] %s2961_s15  ;;  %s3711_s18 = smov (%p36_p0, %s35_s18), 0 }
  0x14   : > { %3671 = sst [smem:[#allocation15_spill]] %s3711_s18  ;;  %s3713_s19 = smov (!%p36_p0, %s38_s19), %s2957_s14 }
  0x15   : > { %p3100_p3 = por %p394_p2, %p393_p1  ;;  %p399_p4 = scmp.ne.s32.totalorder %s2937_s26, %s2933_s25 }
  0x16   : > { %p40_p5 = scmp.ge.s32.totalorder %s3713_s19, 2  ;;  %p400_p6 = scmp.eq.s32.totalorder %s2400_s17, 3 }
  0x17   : > { %s3672_s20 = scalar_select %p3100_p3, 1, 0 }
  0x18   : > { %p2403_p7 = scmp.ge.s32.totalorder %s2961_s15, 1  ;;  %p507_p8 = scmp.lt.s32.totalorder %s2961_s15, 5 }
  0x19   : > { %3673 = sst [smem:[#allocation16_spill]] %s3672_s20  ;;  %s3715_s19 = smov (%p40_p5, %s3713_s19), 0 }
  0x1a   : > { %3674 = sst [smem:[#allocation17_spill]] %s3715_s19  ;;  %p3110_p9 = por %p400_p6, %p399_p4 }
  0x1b   : > { %p508_p10 = pnand %p2403_p7, %p507_p8  ;;  %s380_s22 = ssub.s32 %s2957_s14, %s3715_s19 }
  0x1c   : > { %s3675_s21 = scalar_select %p3110_p9, 1, 0 }
  0x1d   : > { %s383_s23 = sadd.s32 1, %s2941_s27  ;;  %p381_p11 = scmp.eq.s32.totalorder %s380_s22, 0 }
  0x1e   : > { %3676 = sst [smem:[#allocation18_spill]] %s3675_s21  ;;  %511 = sbr.rel (%p508_p10) target bundleno = 5206 (0x1456), region = 72 }
  0x1f   : > { %s3118_s24 = scalar_select %p381_p11, %s2941_s27, %s383_s23  }
  0x20   : > { %s3641_s16 = sand.u32 (!%p508_p10), 1, %s2937_s26   ;;  %s2405_s17 = sshll.u32 (!%p508_p10), %s2949_s29, 1 }
  0x21   : > { %3677 = sst [smem:[#allocation19_spill]] %s3118_s24  ;;  %s2404_s18 = sshll.u32 (!%p508_p10), %s3641_s16, 4 }
  0x22   : > { %p596_p12 = scmp.lt.s32.totalorder (!%p508_p10), %s2405_s17, 3  ;;  %p601_p13 = scmp.lt.s32.totalorder (!%p508_p10), %s2945_s28, 1 }
  0x23   : > { %s3678_s0 = sld [smem:[#allocation20_spill]]  ;;  %s3185_s26 = scalar_lea.vmem [#allocation4], %s2404_s18 }
  0x24   : > { %s3717_s17 = smov (!%p596_p12, %s2405_s17), 3  ;;  %s3679_s3 = sld [smem:[#allocation21_spill]] }
  0x25   : > { %s3126_s30 = scalar_select %p601_p13, %s2945_s28, 1 }
  0x26   : > { %s2406_s22 = sshll.u32 %s3717_s17, 3  ;;  %s3680_s5 = sld [smem:[#allocation22_spill]] }
  0x27   : > { %s2466_s13 = sshll.u32 %s3126_s30, 4  ;;  %s636_s11 = scalar_lea.vmem %s3635_s10, %s3126_s30 }
  0x28   : > { %s3169_s17 = scalar_lea.vmem %s3634_s9, %s2466_s13  ;;  %s644_s25 = scalar_lea.vmem %s3637_s12, %s3126_s30 }
  0x29   : > { %s599_s16 = scalar_lea.vmem %s3678_s0, %s2406_s22  ;;  %s628_s0 = scalar_lea.vmem %s3633_s8, %s3126_s30 }
  0x2a   : > { %s3143_s29 = scalar_lea.vmem %s3679_s3, %s2466_s13  ;;  %s3682_s27 = sld [smem:[#allocation24_spill]] }
  0x2b   : > { %s3683_s20 = sld [smem:[#allocation10_spill]] }
  0x2c   : > { %s3152_s23 = scalar_lea.vmem %s3680_s5, %s2466_s13  ;;  %s2469_s5 = sshll.u32 %s3126_s30, 6 }
  0x30   : > { %s3183_s7 = scalar_lea.vmem %s3682_s27, %s2469_s5 }
  0x31   : > { %p2415_p0 = scmp.ne.s32.totalorder %s3683_s20, 0 }
  0x33   : > { %650 = sbr.rel (%p2415_p0) target bundleno = 58 (0x3a), region = 76 }
  0x38   : > { %v651_v0 = vld [vmem:[%s599_s16] sm:$0xff]  ;;  %vm653_vm0 = vcmask 261120   ;;  %v652_v1 = vld [vmem:[%s599_s16 + $0x8] sm:$0xff] }
  0x39   : > { %654 = vst.msk [vmem:[#allocation2] sm:$0xff] %vm653_vm0, %v651_v0  ;;  %655 = vst.msk [vmem:[#allocation2 + $0x8] sm:$0xff] %vm653_vm0, %v652_v1 }
  0x3a PF: > { %vm693_vm1 = vcmask 261120   ;;  %v3195_v9 = vld [vmem:[%s3143_s29 + $0x8] sm:$0xff]   ;;  %v2963_v10 = vmov 0.0   ;;  %vm2964_vm2 = vmmov 0   ;;  %v3202_v11 = vld [vmem:[%s3143_s29] sm:$0xff]   ;;  %s3684_s13 = scalar_lea.vmem %s3626_s1, %s3126_s30  ;;  %s3685_s18 = scalar_lea.vmem %s3627_s2, %s3126_s30  ;;  %vm790_vm3 = vcmask 64512  }
  0x3b   : > { %2539 = vmatprep.subr.bf16.mxu1 %v2963_v10  ;;  %2543 = vmatprep.mubr.msk.bf16.mxu1 %vm2964_vm2, %v2963_v10  ;;  %v3215_v16 = vld [vmem:[%s3684_s13] ss:$0 sm:$0xff]  ;;  %s3686_s19 = scalar_lea.vmem %s3629_s4, %s3126_s30  ;;  %s2965_s22 = smov 64   ;;  %vm854_vm4 = vcmask 1043456   ;;  %vm1014_vm5 = vcmask 130112   ;;  %vm1130_vm6 = vcmask 195712  }
  0x3c   : > { %2540 = vmatpush3.bf16.msra.mxu1 %v3195_v9  ;;  %2565 = vmatprep.subr.bf16.mxu0 %v2963_v10  ;;  %v3222_v18 = vld [vmem:[%s3685_s18] ss:$0 sm:$0xff]  ;;  %s2966_s14 = smov 96   ;;  %s2967_s24 = smov 80   ;;  %vm1246_vm7 = vcmask 261312  }
  0x3d   : > { %2541 = vmatprep.subr.bf16.mxu1 %v2963_v10  ;;  %2567 = vmatprep.mubr.msk.bf16.mxu0 %vm2964_vm2, %v2963_v10  ;;  %v3234_v22 = vld [vmem:[%s3686_s19] ss:$0 sm:$0xff]  ;;  %s2968_s15 = smov 88   ;;  %s2969_s21 = smov 120  }
  0x3e   : > { %s2970_s20 = smov 112   ;;  %s2971_s3 = smov 72  }
  0x3f   : > { %s2972_s5 = smov 104   ;;  %s2973_s13 = smov 48  }
  0x40   : > { %v3188_v2 = vld [vmem:[#allocation2] sm:$0xff]  ;;  %2542 = vmatpush3.bf16.msra.mxu1 %v3202_v11  ;;  %s2974_s27 = smov 56   ;;  %s2975_s29 = smov 40  }
  0x41   : > { %v694_v3 = vsel %vm693_vm1, %v3188_v2, 0.0  ;;  %2547 = vmatprep.subr.bf16.mxu1 %v2963_v10  ;;  %s3656_s18 = smov 8   ;;  %s3655_s16 = smov 16  }
  0x42   : > { %695 = vadd.xlane.f32.xlu0 %v694_v3  ;;  %s3654_s28 = smov 24   ;;  %s3688_s19 = sld [smem:[#allocation23_spill]] }
  0xcb   : > { %v696_v4 = vpop.xlane.xlu0 %695 }
  0xcc   : > { %v698_v5 = vmul.f32 0.03125, %v696_v4 }
  0xce   : > { %v699_v6 = vsub.f32 %v3188_v2, %v698_v5 }
  0xd0   : > { %v700_v7 = vmul.f32 %v699_v6, %v699_v6 }
  0xd2   : > { %v701_v8 = vsel %vm693_vm1, %v700_v7, 0.0 }
  0xd3   : > { %702 = vadd.xlane.f32.xlu0 %v701_v8 }
 0x15c   : > { %v703_v12 = vpop.xlane.xlu0 %702 }
 0x15d   : > { %v704_v13 = vmul.f32 0.03125, %v703_v12 }
 0x15f   : > { %v705_v14 = vadd.f32 1e-12, %v704_v13 }
 0x161   : > { %2825 = vrsqrt.f32 %v705_v14 }
 0x16e   : > { %v2826_v15 = vpop.eup %2825 }
 0x16f   : > { %v707_v17 = vmul.f32 %v2826_v15, %v699_v6 }
 0x171   : > { %v714_v19 = vmul.f32 %v3215_v16, %v707_v17 }
 0x173   : > { %v721_v20 = vadd.f32 %v3222_v18, %v714_v19 }
 0x175   : > { %v722_v21 = vpack.c.bf16 %v721_v20, %v721_v20 }
 0x177   : > { %2544 = vmatmul.mubr.msk.bf16.vlgmr.msra.gmra.mxu1 %vm693_vm1, %v722_v21 }
 0x178   : > { %2549 = vmatprep.mubr.msk.bf16.mxu1 %vm2964_vm2, %v2963_v10 }
 0x237   : > { %v778_v23 = vpop.f32.mrf.mxu1 }
 0x238   : > { %v779_v24 = vadd.f32 %v3234_v22, %v778_v23 }
 0x239   : > { %v2545_v25 = vpop.f32.mrf.mxu1 }
 0x23a   : > { %v3237_v26 = vpack.c.bf16 %v779_v24, %v779_v24  ;;  %v784_v31 = vmul.f32 0.35355338, %v779_v24 }
 0x23b   : > { %v781_v27 = vpop.f32.mrf.mxu1 }
 0x23c   : > { %849 = vrot.lane.b32.xlu0 %v3237_v26, %s2965_s22  ;;  %788 = vrot.lane.b32.xlu1 %v3237_v26, %s2966_s14  ;;  %v785_v33 = vpack.c.bf16 %v784_v31, %v784_v31 }
 0x23d   : > { %v2546_v28 = vpop.f32.mrf.mxu1 }
 0x2ae   : > { %v789_v29 = vpop.permute.xlu1 %788  ;;  %v850_v32 = vpop.permute.xlu0 %849 }
 0x2af   : > { %v795_v30 = vsel %vm790_vm3, %v789_v29, 0  ;;  %v856_v34 = vsel %vm854_vm4, %v850_v32, 0 }
 0x2b0   : > { %2548 = vmatpush3.bf16.xpose.msra.mxu1 %v795_v30 }
 0x2b1   : > { %2553 = vmatprep.subr.bf16.mxu1 %v2963_v10 }
 0x2b7   : > { %2550 = vmatmul.mubr.msk.bf16.vlgmr.msra.gmra.mxu1 %vm790_vm3, %v785_v33 }
 0x2b8   : > { %2554 = vmatpush3.bf16.msra.mxu1 %v856_v34  ;;  %2555 = vmatprep.mubr.msk.bf16.mxu1 %vm2964_vm2, %v2963_v10 }
 0x2b9   : > { %2559 = vmatprep.subr.bf16.mxu1 %v2963_v10 }
 0x377   : > { %v831_v35 = vpop.f32.mrf.mxu1 }
 0x378   : > { %v837_v36 = vsel %vm790_vm3, %v831_v35, -inf }
 0x379   : > { %838 = vmax.xlane.f32.xlu1 %v837_v36  ;;  %v2551_v37 = vpop.f32.mrf.mxu1 }
 0x37b   : > { %v834_v38 = vpop.f32.mrf.mxu1 }
 0x37d   : > { %v2552_v39 = vpop.f32.mrf.mxu1 }
 0x38a   : > { %1018 = vrot.lane.b32.xlu1 %v3237_v26, %s2967_s24 }
 0x402   : > { %v839_v40 = vpop.xlane.xlu1 %838 }
 0x403   : > { %v840_v41 = vsub.f32 %v831_v35, %v839_v40 }
 0x405   : > { %v841_v42 = vmul.f32 1.442695, %v840_v41 }
 0x406   : > { %v1019_v52 = vpop.permute.xlu1 %1018 }
 0x407   : > { %2827 = vpow2.f32 %v841_v42  ;;  %v1024_v54 = vsel %vm790_vm3, %v1019_v52, 0 }
 0x414   : > { %v2828_v43 = vpop.eup %2827 }
 0x415   : > { %v843_v44 = vsel %vm790_vm3, %v2828_v43, 0.0 }
 0x416   : > { %844 = vadd.xlane.f32.xlu0 %v843_v44 }
 0x42c   : > { %902 = vrot.lane.b32.xlu0 %v3237_v26, %s2968_s15 }
 0x430   : > { %900 = vrot.lane.b32.xlu0 %v785_v33, %s2969_s21 }
 0x434   : > { %1016 = vrot.lane.b32.xlu0 %v785_v33, %s2970_s20 }
 0x438   : > { %1134 = vrot.lane.b32.xlu0 %v3237_v26, %s2971_s3 }
 0x43c   : > { %1132 = vrot.lane.b32.xlu0 %v785_v33, %s2972_s5 }
 0x49f   : > { %v845_v45 = vpop.xlane.xlu0 %844 }
 0x4a0   : > { %2829 = vrcp.f32 %v845_v45 }
 0x4a3   : > { %v903_v47 = vpop.permute.xlu0 %902 }
 0x4a4   : > { %v908_v50 = vsel %vm790_vm3, %v903_v47, 0 }
 0x4a7   : > { %v901_v51 = vpop.permute.xlu0 %900 }
 0x4ab   : > { %v1017_v53 = vpop.permute.xlu0 %1016 }
 0x4ad   : > { %v2830_v46 = vpop.eup %2829 }
 0x4ae   : > { %v847_v48 = vmul.f32 %v2830_v46, %v2828_v43 }
 0x4af   : > { %v1135_v55 = vpop.permute.xlu0 %1134 }
 0x4b0   : > { %v848_v49 = vpack.c.bf16 %v847_v48, %v847_v48  ;;  %v1140_v56 = vsel %vm790_vm3, %v1135_v55, 0 }
 0x4b2   : > { %2556 = vmatmul.mubr.msk.bf16.vlgmr.msra.gmra.mxu1 %vm790_vm3, %v848_v49 }
 0x4b3   : > { %2560 = vmatpush3.bf16.xpose.msra.mxu1 %v908_v50  ;;  %2561 = vmatprep.mubr.msk.bf16.mxu1 %vm2964_vm2, %v2963_v10  ;;  %v1133_v57 = vpop.permute.xlu0 %1132 }
 0x4b4   : > { %2571 = vmatprep.subr.bf16.mxu1 %v2963_v10 }
 0x4ba   : > { %2562 = vmatmul.mubr.msk.bf16.vlgmr.msra.gmra.mxu1 %vm790_vm3, %v901_v51 }
 0x4bb   : > { %2572 = vmatpush3.bf16.xpose.msra.mxu1 %v1024_v54  ;;  %2573 = vmatprep.mubr.msk.bf16.mxu1 %vm2964_vm2, %v2963_v10 }
 0x4bc   : > { %2583 = vmatprep.subr.bf16.mxu1 %v2963_v10 }
 0x4c2   : > { %2574 = vmatmul.mubr.msk.bf16.vlgmr.msra.gmra.mxu1 %vm790_vm3, %v1017_v53 }
 0x4c3   : > { %2584 = vmatpush3.bf16.xpose.msra.mxu1 %v1140_v56  ;;  %2585 = vmatprep.mubr.msk.bf16.mxu1 %vm2964_vm2, %v2963_v10  ;;  %v3309_v56 = vld [vmem:[%s3152_s23 + $0x8] sm:$0xff]  }
 0x4c4   : > { %2595 = vmatprep.subr.bf16.mxu1 %v2963_v10 }
 0x4ca   : > { %2586 = vmatmul.mubr.msk.bf16.vlgmr.msra.gmra.mxu1 %vm790_vm3, %v1133_v57 }
 0x4cb   : > { %2599 = vmatprep.mubr.msk.bf16.mxu1 %vm2964_vm2, %v2963_v10  ;;  %2596 = vmatpush3.bf16.msra.mxu1 %v3309_v56 }
 0x4cc   : > { %2597 = vmatprep.subr.bf16.mxu1 %v2963_v10 }
 0x572   : > { %v892_v58 = vpop.f32.mrf.mxu1 }
 0x573   : > { %898 = vst.msk [vmem:[#allocation3] sm:$0xff] %vm790_vm3, %v892_v58  ;;  %v3313_v58 = vld [vmem:[%s3152_s23] sm:$0xff]  }
 0x574   : > { %v2557_v59 = vpop.f32.mrf.mxu1  ;;  %2598 = vmatpush3.bf16.msra.mxu1 %v3313_v58 }
 0x575   : > { %2611 = vmatprep.subr.bf16.mxu1 %v2963_v10 }
 0x576   : > { %v895_v60 = vpop.f32.mrf.mxu1 }
 0x578   : > { %v2558_v61 = vpop.f32.mrf.mxu1 }
 0x57a   : > { %v944_v62 = vpop.f32.mrf.mxu1 }
 0x57b   : > { %v950_v63 = vsel %vm790_vm3, %v944_v62, -inf }
 0x57c   : > { %951 = vmax.xlane.f32.xlu0 %v950_v63  ;;  %v2563_v0 = vpop.f32.mrf.mxu1 }
 0x57e   : > { %v947_v1 = vpop.f32.mrf.mxu1 }
 0x580   : > { %v2564_v3 = vpop.f32.mrf.mxu1 }
 0x582   : > { %v1060_v4 = vpop.f32.mrf.mxu1 }
 0x583   : > { %v1066_v5 = vsel %vm790_vm3, %v1060_v4, -inf }
 0x584   : > { %1067 = vmax.xlane.f32.xlu1 %v1066_v5  ;;  %v2575_v6 = vpop.f32.mrf.mxu1 }
 0x586   : > { %v1063_v7 = vpop.f32.mrf.mxu1 }
 0x588   : > { %v2576_v8 = vpop.f32.mrf.mxu1 }
 0x58a   : > { %v1176_v12 = vpop.f32.mrf.mxu1 }
 0x58b   : > { %v1182_v13 = vsel %vm790_vm3, %v1176_v12, -inf }
 0x58c   : > { %1183 = vmax.xlane.f32.xlu0 %v1182_v13  ;;  %v2587_v14 = vpop.f32.mrf.mxu1 }
 0x58e   : > { %v1179_v15 = vpop.f32.mrf.mxu1 }
 0x590   : > { %v2588_v17 = vpop.f32.mrf.mxu1 }
 0x595   : > { %1078 = vrot.lane.b32.xlu1 %v3237_v26, %s2973_s13 }
 0x605   : > { %v952_v19 = vpop.xlane.xlu0 %951 }
 0x606   : > { %v953_v20 = vsub.f32 %v944_v62, %v952_v19 }
 0x608   : > { %v954_v21 = vmul.f32 1.442695, %v953_v20 }
 0x60a   : > { %2831 = vpow2.f32 %v954_v21 }
 0x60d   : > { %v1068_v23 = vpop.xlane.xlu1 %1067 }
 0x60e   : > { %v1069_v24 = vsub.f32 %v1060_v4, %v1068_v23 }
 0x610   : > { %v1070_v25 = vmul.f32 1.442695, %v1069_v24 }
 0x611   : > { %v1079_v38 = vpop.permute.xlu1 %1078 }
 0x612   : > { %2833 = vpow2.f32 %v1070_v25  ;;  %v1084_v45 = vsel %vm854_vm4, %v1079_v38, 0 }
 0x615   : > { %v1184_v27 = vpop.xlane.xlu0 %1183 }
 0x616   : > { %v1185_v28 = vsub.f32 %v1176_v12, %v1184_v27  ;;  %v3326_v12 = vld [vmem:[#allocation2 + $0x8] sm:$0xff] }
 0x617   : > { %v2832_v29 = vpop.eup %2831  ;;  %v1509_v13 = vsel %vm693_vm1, %v3326_v12, 0.0 }
 0x618   : > { %v1186_v30 = vmul.f32 1.442695, %v1185_v28  ;;  %v956_v31 = vsel %vm790_vm3, %v2832_v29, 0.0 }
 0x619   : > { %957 = vadd.xlane.f32.xlu0 %v956_v31 }
 0x61a   : > { %2835 = vpow2.f32 %v1186_v30 }
 0x61f   : > { %v2834_v32 = vpop.eup %2833 }
 0x620   : > { %v1072_v33 = vsel %vm790_vm3, %v2834_v32, 0.0 }
 0x621   : > { %1073 = vadd.xlane.f32.xlu0 %v1072_v33 }
 0x627   : > { %v2836_v34 = vpop.eup %2835 }
 0x628   : > { %v1188_v35 = vsel %vm790_vm3, %v2836_v34, 0.0 }
 0x629   : > { %1189 = vadd.xlane.f32.xlu1 %v1188_v35  ;;  %v3348_v35 = vld [vmem:[%s3169_s17 + $0x8] sm:$0xff]  }
 0x637   : > { %962 = vrot.lane.b32.xlu0 %v3237_v26, %s2974_s27 }
 0x63a   : > { %1194 = vrot.lane.b32.xlu1 %v3237_v26, %s2975_s29 }
 0x6a2   : > { %v958_v36 = vpop.xlane.xlu0 %957 }
 0x6a3   : > { %2837 = vrcp.f32 %v958_v36  ;;  %v3353_v36 = vld [vmem:[%s3169_s17] sm:$0xff]  }
 0x6aa   : > { %v1074_v37 = vpop.xlane.xlu0 %1073 }
 0x6ab   : > { %2839 = vrcp.f32 %v1074_v37 }
 0x6ae   : > { %v963_v39 = vpop.permute.xlu0 %962 }
 0x6af   : > { %v968_v40 = vsel %vm854_vm4, %v963_v39, 0 }
 0x6b0   : > { %v2838_v41 = vpop.eup %2837  ;;  %2566 = vmatpush3.bf16.msra.mxu0 %v968_v40 }
 0x6b1   : > { %2577 = vmatprep.subr.bf16.mxu0 %v2963_v10  ;;  %v960_v42 = vmul.f32 %v2838_v41, %v2832_v29 }
 0x6b2   : > { %v1190_v43 = vpop.xlane.xlu1 %1189 }
 0x6b3   : > { %2841 = vrcp.f32 %v1190_v43  ;;  %v961_v44 = vpack.c.bf16 %v960_v42, %v960_v42 }
 0x6b5   : > { %2568 = vmatmul.mubr.msk.bf16.vlgmr.msra.gmra.mxu0 %vm790_vm3, %v961_v44 }
 0x6b6   : > { %2578 = vmatpush3.bf16.msra.mxu0 %v1084_v45  ;;  %2579 = vmatprep.mubr.msk.bf16.mxu0 %vm2964_vm2, %v2963_v10  ;;  %v1195_v47 = vpop.permute.xlu1 %1194 }
 0x6b7   : > { %2589 = vmatprep.subr.bf16.mxu0 %v2963_v10  ;;  %v1200_v49 = vsel %vm854_vm4, %v1195_v47, 0 }
 0x6b8   : > { %v2840_v26 = vpop.eup %2839 }
 0x6b9   : > { %v1076_v46 = vmul.f32 %v2840_v26, %v2834_v32  ;;  %v3369_v26 = vld [vmem:[%s628_s0] ss:$0 sm:$0xff] }
 0x6bb   : > { %v1077_v48 = vpack.c.bf16 %v1076_v46, %v1076_v46 }
 0x6bd   : > { %2580 = vmatmul.mubr.msk.bf16.vlgmr.msra.gmra.mxu0 %vm790_vm3, %v1077_v48 }
 0x6be   : > { %2590 = vmatpush3.bf16.msra.mxu0 %v1200_v49  ;;  %2591 = vmatprep.mubr.msk.bf16.mxu0 %vm2964_vm2, %v2963_v10 }
 0x6bf   : > { %2603 = vmatprep.subr.bf16.mxu0 %v2963_v10 }
 0x6c0   : > { %v2842_v50 = vpop.eup %2841 }
 0x6c1   : > { %v1192_v51 = vmul.f32 %v2842_v50, %v2836_v34 }
 0x6c3   : > { %v1193_v52 = vpack.c.bf16 %v1192_v51, %v1192_v51 }
 0x6c5   : > { %2592 = vmatmul.mubr.msk.bf16.vlgmr.msra.gmra.mxu0 %vm790_vm3, %v1193_v52 }
 0x6c6   : > { %2607 = vmatprep.mubr.msk.bf16.mxu0 %vm2964_vm2, %v2963_v10  ;;  %2604 = vmatpush3.bf16.msra.mxu0 %v3348_v35 }
 0x6c7   : > { %2605 = vmatprep.subr.bf16.mxu0 %v2963_v10 }
 0x6ca   : > { %2606 = vmatpush3.bf16.msra.mxu0 %v3353_v36 }
 0x6cb   : > { %2631 = vmatprep.subr.bf16.mxu0 %v2963_v10 }
 0x775   : > { %v1004_v53 = vpop.f32.mrf.mxu0 }
 0x776   : > { %1011 = vrot.lane.b32.xlu1 %v1004_v53, %s3656_s18 }
 0x777   : > { %v2569_v54 = vpop.f32.mrf.mxu0 }
 0x778   : > { %v3406_v54 = vld [vmem:[%s3183_s7 + $0x18] sm:$0xff]  }
 0x779   : > { %v1007_v55 = vpop.f32.mrf.mxu0 }
 0x77a   : > { %v3411_v55 = vld [vmem:[%s3183_s7 + $0x10] sm:$0xff]  }
 0x77b   : > { %v2570_v57 = vpop.f32.mrf.mxu0 }
 0x77c   : > { %v3416_v57 = vld [vmem:[%s3183_s7 + $0x8] sm:$0xff]  }
 0x77d   : > { %v1120_v59 = vpop.f32.mrf.mxu0 }
 0x77e   : > { %1127 = vrot.lane.b32.xlu0 %v1120_v59, %s3655_s16  ;;  %s3689_s16 = scalar_lea.vmem %s3688_s19, %s3126_s30  ;;  %v3420_v59 = vld [vmem:[%s3183_s7] sm:$0xff]  }
 0x77f   : > { %v2581_v60 = vpop.f32.mrf.mxu0  ;;  %v3362_v44 = vld [vmem:[%s3689_s16] ss:$0 sm:$0xff] }
 0x780   : > { %v3430_v60 = vld [vmem:[%s636_s11] ss:$0 sm:$0xff] }
 0x781   : > { %v1123_v61 = vpop.f32.mrf.mxu0 }
 0x783   : > { %v2582_v62 = vpop.f32.mrf.mxu0 }
 0x785   : > { %v1236_v63 = vpop.f32.mrf.mxu0 }
 0x786   : > { %1243 = vrot.lane.b32.xlu1 %v1236_v63, %s3654_s28  ;;  %s3687_s28 = scalar_lea.vmem %s3631_s6, %s3126_s30  ;;  %s3690_s30 = smov 8  }
 0x787   : > { %v2593_v0 = vpop.f32.mrf.mxu0  ;;  %v3335_v14 = vld [vmem:[%s3687_s28] ss:$0 sm:$0xff] }
 0x789   : > { %v1239_v1 = vpop.f32.mrf.mxu0 }
 0x78b   : > { %v2594_v3 = vpop.f32.mrf.mxu0 }
 0x7aa   : > { %1510 = vadd.xlane.f32.xlu1 %v1509_v13 }
 0x7e8   : > { %v1012_v4 = vpop.permute.xlu1 %1011 }
 0x7e9   : > { %1015 = vst.msk [vmem:[#allocation3] sm:$0xff] %vm1014_vm5, %v1012_v4 }
 0x7f0   : > { %v1128_v5 = vpop.permute.xlu0 %1127 }
 0x7f1   : > { %1131 = vst.msk [vmem:[#allocation3] sm:$0xff] %vm1130_vm6, %v1128_v5 }
 0x7f8   : > { %v1244_v6 = vpop.permute.xlu1 %1243 }
 0x7f9   : > { %1247 = vst.msk [vmem:[#allocation3] sm:$0xff] %vm1246_vm7, %v1244_v6 }
 0x800   : > { %v1248_v7 = vld [vmem:[#allocation3] sm:$0xff] }
 0x801   : > { %v1249_v8 = vpack.c.bf16 %v1248_v7, %v1248_v7 }
 0x803   : > { %2600 = vmatmul.mubr.msk.bf16.vlgmr.msra.gmra.mxu1 %vm693_vm1, %v1249_v8 }
 0x804   : > { %2627 = vmatprep.mubr.msk.bf16.mxu1 %vm2964_vm2, %v2963_v10 }
 0x833   : > { %v1511_v25 = vpop.xlane.xlu1 %1510 }
 0x834   : > { %v1512_v27 = vmul.f32 0.03125, %v1511_v25 }
 0x836   : > { %v1513_v30 = vsub.f32 %v3326_v12, %v1512_v27 }
 0x838   : > { %v1514_v33 = vmul.f32 %v1513_v30, %v1513_v30 }
 0x83a   : > { %v1515_v34 = vsel %vm693_vm1, %v1514_v33, 0.0 }
 0x8c3   : > { %v1305_v15 = vpop.f32.mrf.mxu1 }
 0x8c4   : > { %v1306_v17 = vadd.f32 %v3335_v14, %v1305_v15 }
 0x8c5   : > { %v2601_v19 = vpop.f32.mrf.mxu1 }
 0x8c6   : > { %v3339_v20 = vadd.f32 %v1306_v17, %v3188_v2 }
 0x8c7   : > { %v1308_v21 = vpop.f32.mrf.mxu1 }
 0x8c8   : > { %v1312_v23 = vsel %vm693_vm1, %v3339_v20, 0.0 }
 0x8c9   : > { %1313 = vadd.xlane.f32.xlu0 %v1312_v23  ;;  %v2602_v24 = vpop.f32.mrf.mxu1 }
 0x952   : > { %v1314_v28 = vpop.xlane.xlu0 %1313 }
 0x953   : > { %v1315_v29 = vmul.f32 0.03125, %v1314_v28 }
 0x955   : > { %v1316_v31 = vsub.f32 %v3339_v20, %v1315_v29 }
 0x957   : > { %v1317_v32 = vmul.f32 %v1316_v31, %v1316_v31 }
 0x959   : > { %v1318_v2 = vsel %vm693_vm1, %v1317_v32, 0.0  ;;  %v3456_v32 = vld [vmem:[%s644_s25] ss:$0 sm:$0xff]  ;;  %s3691_s25 = smov 16  }
 0x95a   : > { %1319 = vadd.xlane.f32.xlu0 %v1318_v2 }
 0x95e   : > { %1516 = vadd.xlane.f32.xlu0 %v1515_v34 }
 0x9e3   : > { %v1320_v37 = vpop.xlane.xlu0 %1319 }
 0x9e4   : > { %v1321_v38 = vmul.f32 0.03125, %v1320_v37 }
 0x9e6   : > { %v1322_v39 = vadd.f32 1e-12, %v1321_v38 }
 0x9e7   : > { %v1517_v40 = vpop.xlane.xlu0 %1516 }
 0x9e8   : > { %2843 = vrsqrt.f32 %v1322_v39  ;;  %v1518_v41 = vmul.f32 0.03125, %v1517_v40 }
 0x9ea   : > { %v1519_v42 = vadd.f32 1e-12, %v1518_v41 }
 0x9ec   : > { %2845 = vrsqrt.f32 %v1519_v42 }
 0x9f5   : > { %v2844_v43 = vpop.eup %2843 }
 0x9f6   : > { %v1324_v45 = vmul.f32 %v2844_v43, %v1316_v31 }
 0x9f8   : > { %v1331_v46 = vmul.f32 %v3362_v44, %v1324_v45 }
 0x9f9   : > { %v2846_v47 = vpop.eup %2845 }
 0x9fa   : > { %v1521_v48 = vmul.f32 %v2846_v47, %v1513_v30  ;;  %v1338_v49 = vadd.f32 %v3369_v26, %v1331_v46 }
 0x9fc   : > { %v1339_v50 = vpack.c.bf16 %v1338_v49, %v1338_v49  ;;  %v1522_v51 = vmul.f32 %v3215_v16, %v1521_v48  ;;  %v3391_v16 = vld [vmem:[%s3183_s7 + $0x30] sm:$0xff]  }
 0x9fe   : > { %2608 = vmatmul.mubr.msk.bf16.vlgmr.msra.gmra.mxu0 %vm693_vm1, %v1339_v50  ;;  %v1523_v52 = vadd.f32 %v3222_v18, %v1522_v51  ;;  %v3401_v18 = vld [vmem:[%s3183_s7 + $0x20] sm:$0xff]  }
 0x9ff   : > { %2632 = vmatpush3.bf16.msra.mxu0 %v3195_v9  ;;  %2635 = vmatprep.mubr.msk.bf16.mxu0 %vm2964_vm2, %v2963_v10  ;;  %v3386_v9 = vld [vmem:[%s3183_s7 + $0x38] sm:$0xff]  }
 0xa00   : > { %2633 = vmatprep.subr.bf16.mxu0 %v2963_v10  ;;  %v1524_v53 = vpack.c.bf16 %v1523_v52, %v1523_v52  ;;  %2612 = vmatpush3.bf16.msra.mxu1 %v3386_v9 }
 0xa01   : > { %2613 = vmatprep.subr.bf16.mxu1 %v2963_v10 }
 0xa03   : > { %2634 = vmatpush3.bf16.msra.mxu0 %v3202_v11  ;;  %v3396_v11 = vld [vmem:[%s3183_s7 + $0x28] sm:$0xff]  }
 0xa04   : > { %2639 = vmatprep.subr.bf16.mxu0 %v2963_v10  ;;  %2614 = vmatpush3.bf16.msra.mxu1 %v3391_v16 }
 0xa05   : > { %2615 = vmatprep.subr.bf16.mxu1 %v2963_v10 }
 0xa06   : > { %2636 = vmatmul.mubr.msk.bf16.vlgmr.msra.gmra.mxu0 %vm693_vm1, %v1524_v53 }
 0xa07   : > { %2641 = vmatprep.mubr.msk.bf16.mxu0 %vm2964_vm2, %v2963_v10 }
 0xa08   : > { %2616 = vmatpush3.bf16.msra.mxu1 %v3396_v11 }
 0xa09   : > { %2617 = vmatprep.subr.bf16.mxu1 %v2963_v10 }
 0xa0c   : > { %2618 = vmatpush3.bf16.msra.mxu1 %v3401_v18 }
 0xa0d   : > { %2619 = vmatprep.subr.bf16.mxu1 %v2963_v10 }
 0xa10   : > { %2620 = vmatpush3.bf16.msra.mxu1 %v3406_v54 }
 0xa11   : > { %2621 = vmatprep.subr.bf16.mxu1 %v2963_v10 }
 0xa14   : > { %2622 = vmatpush3.bf16.msra.mxu1 %v3411_v55 }
 0xa15   : > { %2623 = vmatprep.subr.bf16.mxu1 %v2963_v10 }
 0xa18   : > { %2624 = vmatpush3.bf16.msra.mxu1 %v3416_v57 }
 0xa19   : > { %2625 = vmatprep.subr.bf16.mxu1 %v2963_v10 }
 0xa1c   : > { %2626 = vmatpush3.bf16.msra.mxu1 %v3420_v59 }
 0xa1d   : > { %2657 = vmatprep.subr.bf16.mxu1 %v2963_v10 }
 0xabe   : > { %v1395_v61 = vpop.f32.mrf.mxu0 }
 0xabf   : > { %v1396_v62 = vadd.f32 %v3430_v60, %v1395_v61 }
 0xac0   : > { %v2609_v63 = vpop.f32.mrf.mxu0 }
 0xac1   : > { %v1402_v0 = vmul.f32 %v1396_v62, %v1396_v62  ;;  %v1401_v23 = vmul.f32 0.5, %v1396_v62 }
 0xac2   : > { %v1398_v1 = vpop.f32.mrf.mxu0 }
 0xac3   : > { %v1403_v3 = vmul.f32 %v1402_v0, %v1396_v62 }
 0xac4   : > { %v2610_v4 = vpop.f32.mrf.mxu0 }
 0xac5   : > { %v1404_v5 = vmul.f32 0.044715, %v1403_v3 }
 0xac6   : > { %v1562_v6 = vpop.f32.mrf.mxu0 }
 0xac7   : > { %v1405_v7 = vadd.f32 %v1404_v5, %v1396_v62  ;;  %v1563_v8 = vadd.f32 %v3234_v22, %v1562_v6 }
 0xac8   : > { %v2637_v13 = vpop.f32.mrf.mxu0 }
 0xac9   : > { %v1406_v15 = vmul.f32 0.7978846, %v1405_v7  ;;  %v3434_v17 = vpack.c.bf16 %v1563_v8, %v1563_v8  ;;  %v1568_v30 = vmul.f32 0.35355338, %v1563_v8 }
 0xaca   : > { %v1565_v19 = vpop.f32.mrf.mxu0 }
 0xacb   : > { %2847 = vtanh.f32 %v1406_v15  ;;  %1572 = vrot.lane.b32.xlu0 %v3434_v17, %s2966_s14  ;;  %v1569_v31 = vpack.c.bf16 %v1568_v30, %v1568_v30  ;;  %s3693_s14 = sld [smem:[#allocation10_spill]] }
 0xacc   : > { %v2638_v21 = vpop.f32.mrf.mxu0 }
 0xacf   : > { %1684 = vrot.lane.b32.xlu0 %v3434_v17, %s2968_s15 }
 0xad1   : > { %p2460_p1 = scmp.ne.s32.totalorder %s3693_s14, 1 }
 0xad3   : > { %1799 = vrot.lane.b32.xlu0 %v3434_v17, %s2967_s24 }
 0xad7   : > { %1914 = vrot.lane.b32.xlu0 %v3434_v17, %s2971_s3 }
 0xad8   : > { %v2848_v22 = vpop.eup %2847 }
 0xad9   : > { %v1408_v24 = vadd.f32 1.0, %v2848_v22 }
 0xadb   : > { %v1409_v25 = vmul.f32 %v1408_v24, %v1401_v23 }
 0xadd   : > { %v1410_v27 = vpack.c.bf16 %v1409_v25, %v1409_v25 }
 0xadf   : > { %2628 = vmatmul.mubr.bf16.vlgmr.msra.gmra.mxu1 %v1410_v27 }
 0xae0   : > { %2659 = vmatprep.mubr.msk.bf16.mxu1 %vm2964_vm2, %v2963_v10 }
 0xb3d   : > { %v1573_v28 = vpop.permute.xlu0 %1572 }
 0xb3e   : > { %v1578_v29 = vsel %vm790_vm3, %v1573_v28, 0 }
 0xb3f   : > { %2640 = vmatpush3.bf16.xpose.msra.mxu0 %v1578_v29 }
 0xb40   : > { %2645 = vmatprep.subr.bf16.mxu0 %v2963_v10 }
 0xb41   : > { %v1685_v62 = vpop.permute.xlu0 %1684 }
 0xb42   : > { %v1690_v0 = vsel %vm790_vm3, %v1685_v62, 0 }
 0xb45   : > { %v1800_v1 = vpop.permute.xlu0 %1799 }
 0xb46   : > { %2642 = vmatmul.mubr.msk.bf16.vlgmr.msra.gmra.mxu0 %vm790_vm3, %v1569_v31  ;;  %v1805_v4 = vsel %vm790_vm3, %v1800_v1, 0 }
 0xb47   : > { %2647 = vmatprep.mubr.msk.bf16.mxu0 %vm2964_vm2, %v2963_v10 }
 0xb49   : > { %v1915_v5 = vpop.permute.xlu0 %1914 }
 0xb4a   : > { %v1920_v7 = vsel %vm790_vm3, %v1915_v5, 0 }
 0xb9f   : > { %v1499_v33 = vpop.f32.mrf.mxu1 }
 0xba0   : > { %v1500_v2 = vadd.f32 %v3456_v32, %v1499_v33 }
 0xba1   : > { %v2629_v34 = vpop.f32.mrf.mxu1 }
 0xba2   : > { %v1505_v37 = vadd.f32 %v1500_v2, %v3339_v20 }
 0xba3   : > { %v1502_v38 = vpop.f32.mrf.mxu1 }
 0xba4   : > { %1506 = vst.msk [vmem:[#allocation2] sm:$0xff] %vm693_vm1, %v1505_v37 }
 0xba5   : > { %v2630_v39 = vpop.f32.mrf.mxu1 }
 0xc06   : > { %v1614_v40 = vpop.f32.mrf.mxu0 }
 0xc07   : > { %v1620_v41 = vsel %vm790_vm3, %v1614_v40, -inf }
 0xc08   : > { %1621 = vmax.xlane.f32.xlu1 %v1620_v41  ;;  %v2643_v42 = vpop.f32.mrf.mxu0 }
 0xc0a   : > { %v1617_v43 = vpop.f32.mrf.mxu0 }
 0xc0c   : > { %v2644_v45 = vpop.f32.mrf.mxu0 }
 0xc91   : > { %v1622_v46 = vpop.xlane.xlu1 %1621 }
 0xc92   : > { %v1623_v47 = vsub.f32 %v1614_v40, %v1622_v46 }
 0xc94   : > { %v1624_v48 = vmul.f32 1.442695, %v1623_v47 }
 0xc96   : > { %2849 = vpow2.f32 %v1624_v48 }
 0xca3   : > { %v2850_v49 = vpop.eup %2849 }
 0xca4   : > { %v1626_v50 = vsel %vm790_vm3, %v2850_v49, 0.0 }
 0xca5   : > { %1627 = vadd.xlane.f32.xlu1 %v1626_v50 }
 0xcb6   : > { %1632 = vrot.lane.b32.xlu1 %v3434_v17, %s2965_s22  ;;  %s3692_s22 = smov 24  }
 0xcba   : > { %1682 = vrot.lane.b32.xlu1 %v1569_v31, %s2969_s21 }
 0xcbe   : > { %1797 = vrot.lane.b32.xlu1 %v1569_v31, %s2970_s20 }
 0xcc2   : > { %1912 = vrot.lane.b32.xlu1 %v1569_v31, %s2972_s5 }
 0xd2e   : > { %v1628_v20 = vpop.xlane.xlu1 %1627 }
 0xd2f   : > { %2851 = vrcp.f32 %v1628_v20 }
 0xd32   : > { %v1633_v51 = vpop.permute.xlu1 %1632 }
 0xd33   : > { %v1638_v52 = vsel %vm854_vm4, %v1633_v51, 0 }
 0xd34   : > { %2646 = vmatpush3.bf16.msra.mxu0 %v1638_v52 }
 0xd35   : > { %2651 = vmatprep.subr.bf16.mxu0 %v2963_v10 }
 0xd36   : > { %v1683_v3 = vpop.permute.xlu1 %1682 }
 0xd3a   : > { %v1798_v6 = vpop.permute.xlu1 %1797 }
 0xd3c   : > { %v2852_v53 = vpop.eup %2851 }
 0xd3d   : > { %v1630_v61 = vmul.f32 %v2852_v53, %v2850_v49 }
 0xd3e   : > { %v1913_v8 = vpop.permute.xlu1 %1912 }
 0xd3f   : > { %v1631_v63 = vpack.c.bf16 %v1630_v61, %v1630_v61 }
 0xd41   : > { %2648 = vmatmul.mubr.msk.bf16.vlgmr.msra.gmra.mxu0 %vm790_vm3, %v1631_v63 }
 0xd42   : > { %2652 = vmatpush3.bf16.xpose.msra.mxu0 %v1690_v0  ;;  %2653 = vmatprep.mubr.msk.bf16.mxu0 %vm2964_vm2, %v2963_v10 }
 0xd43   : > { %2663 = vmatprep.subr.bf16.mxu0 %v2963_v10 }
 0xd49   : > { %2654 = vmatmul.mubr.msk.bf16.vlgmr.msra.gmra.mxu0 %vm790_vm3, %v1683_v3 }
 0xd4a   : > { %2664 = vmatpush3.bf16.xpose.msra.mxu0 %v1805_v4  ;;  %2665 = vmatprep.mubr.msk.bf16.mxu0 %vm2964_vm2, %v2963_v10 }
 0xd4b   : > { %2675 = vmatprep.subr.bf16.mxu0 %v2963_v10 }
 0xd51   : > { %2666 = vmatmul.mubr.msk.bf16.vlgmr.msra.gmra.mxu0 %vm790_vm3, %v1798_v6 }
 0xd52   : > { %2676 = vmatpush3.bf16.xpose.msra.mxu0 %v1920_v7  ;;  %2677 = vmatprep.mubr.msk.bf16.mxu0 %vm2964_vm2, %v2963_v10 }
 0xd53   : > { %2687 = vmatprep.subr.bf16.mxu0 %v2963_v10 }
 0xd59   : > { %2678 = vmatmul.mubr.msk.bf16.vlgmr.msra.gmra.mxu0 %vm790_vm3, %v1913_v8 }
 0xd5a   : > { %2688 = vmatpush3.bf16.msra.mxu0 %v3309_v56  ;;  %2691 = vmatprep.mubr.msk.bf16.mxu0 %vm2964_vm2, %v2963_v10 }
 0xd5b   : > { %2689 = vmatprep.subr.bf16.mxu0 %v2963_v10 }
 0xd5e   : > { %2690 = vmatpush3.bf16.msra.mxu0 %v3313_v58 }
 0xd5f   : > { %2703 = vmatprep.subr.bf16.mxu0 %v2963_v10 }
 0xe01   : > { %v1674_v13 = vpop.f32.mrf.mxu0 }
 0xe02   : > { %1680 = vst.msk [vmem:[#allocation3] sm:$0xff] %vm790_vm3, %v1674_v13 }
 0xe03   : > { %v2649_v15 = vpop.f32.mrf.mxu0 }
 0xe05   : > { %v1677_v19 = vpop.f32.mrf.mxu0 }
 0xe07   : > { %v2650_v21 = vpop.f32.mrf.mxu0 }
 0xe09   : > { %v1726_v22 = vpop.f32.mrf.mxu0 }
 0xe0a   : > { %v1732_v23 = vsel %vm790_vm3, %v1726_v22, -inf }
 0xe0b   : > { %1733 = vmax.xlane.f32.xlu0 %v1732_v23  ;;  %v2655_v56 = vpop.f32.mrf.mxu0 }
 0xe0d   : > { %v1729_v24 = vpop.f32.mrf.mxu0 }
 0xe0f   : > { %v2656_v25 = vpop.f32.mrf.mxu0 }
 0xe11   : > { %v1841_v27 = vpop.f32.mrf.mxu0 }
 0xe12   : > { %v1847_v28 = vsel %vm790_vm3, %v1841_v27, -inf }
 0xe13   : > { %1848 = vmax.xlane.f32.xlu1 %v1847_v28  ;;  %v2667_v58 = vpop.f32.mrf.mxu0 }
 0xe15   : > { %v1844_v29 = vpop.f32.mrf.mxu0 }
 0xe17   : > { %v2668_v30 = vpop.f32.mrf.mxu0 }
 0xe19   : > { %v1956_v31 = vpop.f32.mrf.mxu0 }
 0xe1a   : > { %v1962_v33 = vsel %vm790_vm3, %v1956_v31, -inf }
 0xe1b   : > { %1963 = vmax.xlane.f32.xlu0 %v1962_v33  ;;  %v2679_v2 = vpop.f32.mrf.mxu0 }
 0xe1d   : > { %v1959_v34 = vpop.f32.mrf.mxu0 }
 0xe1f   : > { %v2680_v37 = vpop.f32.mrf.mxu0 }
 0xe24   : > { %1859 = vrot.lane.b32.xlu1 %v3434_v17, %s2973_s13 }
 0xe94   : > { %v1734_v38 = vpop.xlane.xlu0 %1733 }
 0xe95   : > { %v1735_v39 = vsub.f32 %v1726_v22, %v1734_v38 }
 0xe97   : > { %v1736_v40 = vmul.f32 1.442695, %v1735_v39 }
 0xe99   : > { %2853 = vpow2.f32 %v1736_v40 }
 0xe9c   : > { %v1849_v41 = vpop.xlane.xlu1 %1848 }
 0xe9d   : > { %v1850_v42 = vsub.f32 %v1841_v27, %v1849_v41 }
 0xe9f   : > { %v1851_v43 = vmul.f32 1.442695, %v1850_v42 }
 0xea0   : > { %v1860_v62 = vpop.permute.xlu1 %1859 }
 0xea1   : > { %2855 = vpow2.f32 %v1851_v43  ;;  %v1865_v6 = vsel %vm854_vm4, %v1860_v62, 0 }
 0xea4   : > { %v1964_v45 = vpop.xlane.xlu0 %1963 }
 0xea5   : > { %v1965_v46 = vsub.f32 %v1956_v31, %v1964_v45 }
 0xea6   : > { %v2854_v47 = vpop.eup %2853 }
 0xea7   : > { %v1966_v48 = vmul.f32 1.442695, %v1965_v46  ;;  %v1738_v49 = vsel %vm790_vm3, %v2854_v47, 0.0 }
 0xea8   : > { %1739 = vadd.xlane.f32.xlu0 %v1738_v49 }
 0xea9   : > { %2857 = vpow2.f32 %v1966_v48 }
 0xeae   : > { %v2856_v50 = vpop.eup %2855 }
 0xeaf   : > { %v1853_v20 = vsel %vm790_vm3, %v2856_v50, 0.0 }
 0xeb0   : > { %1854 = vadd.xlane.f32.xlu0 %v1853_v20 }
 0xeb6   : > { %v2858_v51 = vpop.eup %2857 }
 0xeb7   : > { %v1968_v52 = vsel %vm790_vm3, %v2858_v51, 0.0 }
 0xeb8   : > { %1969 = vadd.xlane.f32.xlu1 %v1968_v52 }
 0xec6   : > { %1744 = vrot.lane.b32.xlu0 %v3434_v17, %s2974_s27 }
 0xec9   : > { %1974 = vrot.lane.b32.xlu1 %v3434_v17, %s2975_s29 }
 0xf31   : > { %v1740_v53 = vpop.xlane.xlu0 %1739 }
 0xf32   : > { %2859 = vrcp.f32 %v1740_v53 }
 0xf39   : > { %v1855_v61 = vpop.xlane.xlu0 %1854 }
 0xf3a   : > { %2861 = vrcp.f32 %v1855_v61 }
 0xf3d   : > { %v1745_v63 = vpop.permute.xlu0 %1744 }
 0xf3e   : > { %v1750_v0 = vsel %vm854_vm4, %v1745_v63, 0 }
 0xf3f   : > { %v2860_v1 = vpop.eup %2859  ;;  %2658 = vmatpush3.bf16.msra.mxu1 %v1750_v0 }
 0xf40   : > { %2669 = vmatprep.subr.bf16.mxu1 %v2963_v10  ;;  %v1742_v3 = vmul.f32 %v2860_v1, %v2854_v47 }
 0xf41   : > { %v1970_v4 = vpop.xlane.xlu1 %1969 }
 0xf42   : > { %2863 = vrcp.f32 %v1970_v4  ;;  %v1743_v5 = vpack.c.bf16 %v1742_v3, %v1742_v3 }
 0xf44   : > { %2660 = vmatmul.mubr.msk.bf16.vlgmr.msra.gmra.mxu1 %vm790_vm3, %v1743_v5 }
 0xf45   : > { %2670 = vmatpush3.bf16.msra.mxu1 %v1865_v6  ;;  %2671 = vmatprep.mubr.msk.bf16.mxu1 %vm2964_vm2, %v2963_v10  ;;  %v1975_v8 = vpop.permute.xlu1 %1974 }
 0xf46   : > { %2681 = vmatprep.subr.bf16.mxu1 %v2963_v10  ;;  %v1980_v15 = vsel %vm854_vm4, %v1975_v8, 0 }
 0xf47   : > { %v2862_v17 = vpop.eup %2861 }
 0xf48   : > { %v1857_v7 = vmul.f32 %v2862_v17, %v2856_v50 }
 0xf4a   : > { %v1858_v13 = vpack.c.bf16 %v1857_v7, %v1857_v7 }
 0xf4c   : > { %2672 = vmatmul.mubr.msk.bf16.vlgmr.msra.gmra.mxu1 %vm790_vm3, %v1858_v13 }
 0xf4d   : > { %2682 = vmatpush3.bf16.msra.mxu1 %v1980_v15  ;;  %2683 = vmatprep.mubr.msk.bf16.mxu1 %vm2964_vm2, %v2963_v10 }
 0xf4e   : > { %2695 = vmatprep.subr.bf16.mxu1 %v2963_v10 }
 0xf4f   : > { %v2864_v19 = vpop.eup %2863 }
 0xf50   : > { %v1972_v21 = vmul.f32 %v2864_v19, %v2858_v51 }
 0xf52   : > { %v1973_v22 = vpack.c.bf16 %v1972_v21, %v1972_v21 }
 0xf54   : > { %2684 = vmatmul.mubr.msk.bf16.vlgmr.msra.gmra.mxu1 %vm790_vm3, %v1973_v22 }
 0xf55   : > { %2696 = vmatpush3.bf16.msra.mxu1 %v3348_v35  ;;  %2699 = vmatprep.mubr.msk.bf16.mxu1 %vm2964_vm2, %v2963_v10 }
 0xf56   : > { %2697 = vmatprep.subr.bf16.mxu1 %v2963_v10 }
 0xf59   : > { %2698 = vmatpush3.bf16.msra.mxu1 %v3353_v36 }
0x1004   : > { %v1786_v23 = vpop.f32.mrf.mxu1 }
0x1005   : > { %1793 = vrot.lane.b32.xlu1 %v1786_v23, %s3690_s30 }
0x1006   : > { %v2661_v56 = vpop.f32.mrf.mxu1 }
0x1008   : > { %v1789_v24 = vpop.f32.mrf.mxu1 }
0x100a   : > { %v2662_v25 = vpop.f32.mrf.mxu1 }
0x100c   : > { %v1901_v27 = vpop.f32.mrf.mxu1 }
0x100d   : > { %1908 = vrot.lane.b32.xlu0 %v1901_v27, %s3691_s25 }
0x100e   : > { %v2673_v28 = vpop.f32.mrf.mxu1 }
0x1010   : > { %v1904_v58 = vpop.f32.mrf.mxu1 }
0x1012   : > { %v2674_v29 = vpop.f32.mrf.mxu1 }
0x1014   : > { %v2016_v35 = vpop.f32.mrf.mxu1 }
0x1015   : > { %2023 = vrot.lane.b32.xlu1 %v2016_v35, %s3692_s22 }
0x1016   : > { %v2685_v30 = vpop.f32.mrf.mxu1 }
0x1018   : > { %v2019_v31 = vpop.f32.mrf.mxu1 }
0x101a   : > { %v2686_v33 = vpop.f32.mrf.mxu1 }
0x1077   : > { %v1794_v2 = vpop.permute.xlu1 %1793 }
0x1078   : > { %1796 = vst.msk [vmem:[#allocation3] sm:$0xff] %vm1014_vm5, %v1794_v2 }
0x107f   : > { %v1909_v36 = vpop.permute.xlu0 %1908 }
0x1080   : > { %1911 = vst.msk [vmem:[#allocation3] sm:$0xff] %vm1130_vm6, %v1909_v36 }
0x1087   : > { %v2024_v34 = vpop.permute.xlu1 %2023 }
0x1088   : > { %2026 = vst.msk [vmem:[#allocation3] sm:$0xff] %vm1246_vm7, %v2024_v34 }
0x108f   : > { %v2027_v37 = vld [vmem:[#allocation3] sm:$0xff] }
0x1090   : > { %v2028_v38 = vpack.c.bf16 %v2027_v37, %v2027_v37 }
0x1092   : > { %2692 = vmatmul.mubr.msk.bf16.vlgmr.msra.gmra.mxu0 %vm693_vm1, %v2028_v38 }
0x1093   : > { %2704 = vmatpush3.bf16.msra.mxu0 %v3386_v9  ;;  %2719 = vmatprep.mubr.msk.bf16.mxu0 %vm2964_vm2, %v2963_v10 }
0x1094   : > { %2705 = vmatprep.subr.bf16.mxu0 %v2963_v10 }
0x1097   : > { %2706 = vmatpush3.bf16.msra.mxu0 %v3391_v16 }
0x1098   : > { %2707 = vmatprep.subr.bf16.mxu0 %v2963_v10 }
0x109b   : > { %2708 = vmatpush3.bf16.msra.mxu0 %v3396_v11 }
0x109c   : > { %2709 = vmatprep.subr.bf16.mxu0 %v2963_v10 }
0x109f   : > { %2710 = vmatpush3.bf16.msra.mxu0 %v3401_v18 }
0x10a0   : > { %2711 = vmatprep.subr.bf16.mxu0 %v2963_v10 }
0x10a3   : > { %2712 = vmatpush3.bf16.msra.mxu0 %v3406_v54 }
0x10a4   : > { %2713 = vmatprep.subr.bf16.mxu0 %v2963_v10 }
0x10a7   : > { %2714 = vmatpush3.bf16.msra.mxu0 %v3411_v55 }
0x10a8   : > { %2715 = vmatprep.subr.bf16.mxu0 %v2963_v10 }
0x10ab   : > { %2716 = vmatpush3.bf16.msra.mxu0 %v3416_v57 }
0x10ac   : > { %2717 = vmatprep.subr.bf16.mxu0 %v2963_v10 }
0x10af   : > { %2718 = vmatpush3.bf16.msra.mxu0 %v3420_v59 }
0x1152   : > { %v2066_v9 = vpop.f32.mrf.mxu0 }
0x1153   : > { %v2067_v16 = vadd.f32 %v3335_v14, %v2066_v9 }
0x1154   : > { %v2693_v11 = vpop.f32.mrf.mxu0 }
0x1155   : > { %v2072_v18 = vadd.f32 %v2067_v16, %v3326_v12 }
0x1156   : > { %v2069_v39 = vpop.f32.mrf.mxu0 }
0x1157   : > { %v2073_v54 = vsel %vm693_vm1, %v2072_v18, 0.0 }
0x1158   : > { %2074 = vadd.xlane.f32.xlu0 %v2073_v54  ;;  %v2694_v40 = vpop.f32.mrf.mxu0 }
0x11e1   : > { %v2075_v55 = vpop.xlane.xlu0 %2074 }
0x11e2   : > { %v2076_v41 = vmul.f32 0.03125, %v2075_v55 }
0x11e4   : > { %v2077_v42 = vsub.f32 %v2072_v18, %v2076_v41 }
0x11e6   : > { %v2078_v43 = vmul.f32 %v2077_v42, %v2077_v42 }
0x11e8   : > { %v2079_v57 = vsel %vm693_vm1, %v2078_v43, 0.0 }
0x11e9   : > { %2080 = vadd.xlane.f32.xlu1 %v2079_v57 }
0x1272   : > { %v2081_v10 = vpop.xlane.xlu1 %2080 }
0x1273   : > { %v2082_v59 = vmul.f32 0.03125, %v2081_v10 }
0x1275   : > { %v2083_v45 = vadd.f32 1e-12, %v2082_v59 }
0x1277   : > { %2865 = vrsqrt.f32 %v2083_v45 }
0x1284   : > { %v2866_v14 = vpop.eup %2865 }
0x1285   : > { %v2085_v46 = vmul.f32 %v2866_v14, %v2077_v42 }
0x1287   : > { %v2086_v12 = vmul.f32 %v3362_v44, %v2085_v46 }
0x1289   : > { %v2087_v47 = vadd.f32 %v3369_v26, %v2086_v12 }
0x128b   : > { %v2088_v48 = vpack.c.bf16 %v2087_v47, %v2087_v47 }
0x128d   : > { %2700 = vmatmul.mubr.msk.bf16.vlgmr.msra.gmra.mxu1 %vm693_vm1, %v2088_v48 }
0x134d   : > { %v2126_v49 = vpop.f32.mrf.mxu1 }
0x134e   : > { %v2127_v50 = vadd.f32 %v3430_v60, %v2126_v49 }
0x134f   : > { %v2701_v20 = vpop.f32.mrf.mxu1 }
0x1350   : > { %v2133_v51 = vmul.f32 %v2127_v50, %v2127_v50  ;;  %v2132_v3 = vmul.f32 0.5, %v2127_v50 }
0x1351   : > { %v2129_v52 = vpop.f32.mrf.mxu1 }
0x1352   : > { %v2134_v53 = vmul.f32 %v2133_v51, %v2127_v50 }
0x1353   : > { %v2702_v61 = vpop.f32.mrf.mxu1 }
0x1354   : > { %v2135_v62 = vmul.f32 0.044715, %v2134_v53 }
0x1356   : > { %v2136_v63 = vadd.f32 %v2135_v62, %v2127_v50 }
0x1358   : > { %v2137_v0 = vmul.f32 0.7978846, %v2136_v63 }
0x135a   : > { %2867 = vtanh.f32 %v2137_v0 }
0x1367   : > { %v2868_v1 = vpop.eup %2867 }
0x1368   : > { %v2139_v44 = vadd.f32 1.0, %v2868_v1 }
0x136a   : > { %v2140_v4 = vmul.f32 %v2139_v44, %v2132_v3 }
0x136c   : > { %v2141_v26 = vpack.c.bf16 %v2140_v4, %v2140_v4 }
0x136e   : > { %2720 = vmatmul.mubr.bf16.vlgmr.msra.gmra.mxu0 %v2141_v26 }
0x142e   : > { %v2176_v5 = vpop.f32.mrf.mxu0 }
0x142f   : > { %v2177_v6 = vadd.f32 %v3456_v32, %v2176_v5 }
0x1430   : > { %v2721_v17 = vpop.f32.mrf.mxu0  ;;  %2187 = sbr.rel (%p2460_p1) target bundleno = 5180 (0x143c), region = 80 }
0x1431   : > { %v2182_v60 = vadd.f32 %v2177_v6, %v2072_v18 }
0x1432   : > { %v2179_v7 = vpop.f32.mrf.mxu0 }
0x1433   : > { %2183 = vst.msk [vmem:[#allocation2 + $0x8] sm:$0xff] %vm693_vm1, %v2182_v60 }
0x1434   : > { %v2722_v8 = vpop.f32.mrf.mxu0 }
0x1435   : > { %v2188_v13 = vld [vmem:[#allocation2] sm:$0xff] }
0x1436   : > { %2190 = vst.msk [vmem:[%s3185_s26] sm:$0xff] %vm693_vm1, %v2188_v13 }
0x143a   : > { %v2189_v15 = vld [vmem:[#allocation2 + $0x8] sm:$0xff] }
0x143b   : > { %2191 = vst.msk [vmem:[%s3185_s26 + $0x8] sm:$0xff] %vm693_vm1, %v2189_v15 }
0x143c PF: > { %s3694_s24 = sld [smem:[#allocation11_spill]]  ;;  %s2206_s29 = sshll.u32 %s3185_s26, 4  ;;  %s3569_s29 = int_to_ptr.vmem [resolvable:$true] %s2206_s29 }
0x143d   : > { %s3695_s15 = sld [smem:[#allocation8_spill]]  ;;  %s2869_s23 = scalar_lea.vmem %s3569_s29, 256 }
0x143e   : > { %s3697_s13 = sld [smem:[#allocation25_spill]]  ;;  %p2870_p2 = scmp.ne.s32.totalorder %s3569_s29, %s2869_s23 }
0x143f   : > { %s2979_s19 = smov [#allocation4]  }
0x1440   : > { %p2871_p4 = pnand %p2870_p2, %p3100_p3  ;;  %s2873_s17 = sshll.u32 %s2979_s19, 4  ;;  %s2874_s17 = int_to_ptr.vmem [resolvable:$false] %s2873_s17 }
0x1441   : > { %s2875_s0 = scalar_lea.vmem %s2874_s17, 512  ;;  %p2876_p6 = scmp.lt.s32.totalorder %s3569_s29, %s2874_s17 }
0x1442   : > { %s2470_s20 = sshll.u32 %s3694_s24, 8  ;;  %p2872_p5 = pneg %p2871_p4 }
0x1443   : > { %s3698_s16 = sand.u32 1, %s3695_s15   ;;  %p2877_p7 = scmp.lt.s32.totalorder %s2875_s0, %s2869_s23 }
0x1444   : > { %s3566_s27 = scalar_lea.hbm %s3697_s13, %s2470_s20  ;;  %s3573_s28 = scalar_lea.sflag [#allocation5], %s3698_s16 }
0x1445   : > { %p2878_p8 = por %p2877_p7, %p2876_p6 }
0x1447   : > { %p2879_p10 = pnand %p2878_p8, %p2872_p5 }
0x1449   : > { %2882 = shalt.err (!%p2879_p10)
}
0x144a   : > { %s2883_s26 = scalar_lea.hbm %s3566_s27, 256  ;;  %s2887_s11 = scalar_lea.hbm %s3697_s13, 512 }
0x144b   : > { %p2884_p11 = scmp.ne.s32.totalorder %s3566_s27, %s2883_s26  ;;  %p2888_p0 = scmp.lt.s32.totalorder %s3566_s27, %s3697_s13 }
0x144c   : > { %p2889_p1 = scmp.lt.s32.totalorder %s2887_s11, %s2883_s26 }
0x144d   : > { %p2885_p12 = pnand %p2884_p11, %p3100_p3 }
0x144e   : > { %p2890_p2 = por %p2889_p1, %p2888_p0 }
0x144f   : > { %p2886_p13 = pneg %p2885_p12 }
0x1451   : > { %p2891_p4 = pnand %p2890_p2, %p2886_p13 }
0x1453   : > { %2894 = shalt.err (!%p2891_p4)
}
0x1454   : > { %s2980_s22 = smov 128   ;;  %s3699_s14 = smov 8  }
0x1455   : > { %2723 = dma.vmem_to_hbm [thread:$0]  (%p3100_p3), %s3569_s29, 256, %s3566_s27, %s3573_s28, %s2980_s22, %s2980_s22, %s3699_s14  }
0x1456 PF: > { %s3700_s24 = sld [smem:[#allocation14_spill]] }
0x1457   : > { %s3701_s15 = sld [smem:[#allocation7_spill]] }
0x145c   : > { %p2729_p5 = scmp.ge.s32.totalorder %s3700_s24, 2 }
0x145d   : > { %s2221_s3 = sand.u32 1, %s3701_s15  }
0x145e   : > { %p2726_p6 = pnand %p2729_p5, %p3110_p9  ;;  %s2222_s5 = scalar_lea.sflag [#allocation5], %s2221_s3 }
0x1460   : > { %p2727_p7 = pneg %p2726_p6 }
0x1462   : > { %2928 = dma.done.wait (%p2727_p7), %s2222_s5, 256  }
0x1463   : > { %2930 = vsyncadd (%p2727_p7), %s2222_s5, 4294967040  ;;  %s26_s15 = sadd.s32 1, %s3700_s24   ;;  %s3703_s25 = sld [smem:[#allocation8_spill]] }
0x1464   : > { %p23_p8 = scmp.ge.s32.totalorder %s26_s15, 6   ;;  %s3704_s26 = sld [smem:[#allocation9_spill]] }
0x1465   : > { %s3705_s27 = sld [smem:[#allocation19_spill]] }
0x1466   : > { %s3706_s28 = sld [smem:[#allocation12_spill]]  ;;  %25 = sbr.rel (!%p23_p8) target bundleno = 12 (0xc), region = 152 }
0x1467   : > { %s3707_s29 = sld [smem:[#allocation13_spill]] }
0x1468   : > { %s3708_s30 = sld [smem:[#allocation15_spill]] }
0x1469   : > { %s3709_s14 = sld [smem:[#allocation17_spill]] }
0x146b   :  { %2227 = vsyncpa [#allocation5], 1 }
0x146c   :  { %2229 = vsyncpa [#allocation5 + $0x1], 1 }

</bundles_post_ra>
